<compile_context>
chip_gen: v7x
topology: tpu7x:2x2x1
jax: 0.10.0
libtpu: 0.0.40
codegen_flags: <defaults>
</compile_context>

<pallas_src>
import functools

import jax
import jax.numpy as jnp
from jax.experimental import pallas as pl
from jax.experimental.pallas import tpu as pltpu

LANE = 128
_VMEM_BUDGET = 12 * 1024 * 1024   # per-step working set cap; fits v5e's 16 MiB default


# ------------------------------ small helpers ------------------------------ #

def _round_up(x, m):
    return (x + m - 1) // m * m


def _pick_tile(extent, candidates):
    for c in candidates:
        if c <= extent and extent % c == 0:
            return c
    return extent


def _pad2(a, rows, cols):
    return jnp.pad(a, ((0, rows - a.shape[0]), (0, cols - a.shape[1])))


# --------------------------- projection kernel ----------------------------- #
# XW = [x1; x2] @ W_enc   (both views batched through one MXU matmul stream),
# tiled over rows (parallel) and the feature reduction axis (arbitrary).

def _proj_kernel(x_ref, w_ref, o_ref, acc_ref, *, nk):
    kk = pl.program_id(1)

    prod = jnp.dot(x_ref[...], w_ref[...], preferred_element_type=jnp.float32)

    @pl.when(kk == 0)
    def _():                      # direct write: no zero-fill + RMW on the first step
        acc_ref[...] = prod

    @pl.when(kk > 0)
    def _():
        acc_ref[...] += prod

    @pl.when(kk == nk - 1)
    def _():
        o_ref[...] = acc_ref[...].astype(o_ref.dtype)


# ------------------------------- main kernel -------------------------------- #
# grid = (num_row_tiles i [parallel], num_col_tiles k [arbitrary, last])
#   acc1 += A1[i,k] @ XW1[k]     acc2 += A2[i,k] @ XW2[k]
# at last k:   H = ReLU(acc + b_enc) ;  P = predictor(H)  (per view, no concat)
#              per-node BYOL loss (rsqrt form), padded rows masked,
#              per-tile partial sum stored lane-dense.

def _bgrl_main_kernel(a1_ref, a2_ref, xw1_ref, xw2_ref,
                      b_enc_ref, w1_ref, b1_ref, w2_ref, b2_ref,
                      out_ref, acc1_ref, acc2_ref,
                      *, tm, n_valid, nk, eps):
    # All grid queries at kernel top level (NOT inside pl.when bodies).
    i = pl.program_id(0)
    k = pl.program_id(1)
    row_mask = (i * tm + jax.lax.broadcasted_iota(jnp.int32, (tm, 1), 0)) < n_valid

    # Neighborhood aggregation (bf16 operands, f32 accumulation on the MXU).
    prod1 = jnp.dot(a1_ref[...], xw1_ref[...], preferred_element_type=jnp.float32)
    prod2 = jnp.dot(a2_ref[...], xw2_ref[...], preferred_element_type=jnp.float32)

    @pl.when(k == 0)
    def _():                      # direct write on first reduction step
        acc1_ref[...] = prod1
        acc2_ref[...] = prod2

    @pl.when(k > 0)
    def _():
        acc1_ref[...] += prod1
        acc2_ref[...] += prod2

    @pl.when(k == nk - 1)
    def _():
        f32 = jnp.float32
        b_enc = b_enc_ref[...]
        w1, b1 = w1_ref[...], b1_ref[...]
        w2, b2 = w2_ref[...], b2_ref[...]

        # Encoder epilogue (f32 elementwise).
        h1 = jnp.maximum(acc1_ref[...] + b_enc, 0.0)
        h2 = jnp.maximum(acc2_ref[...] + b_enc, 0.0)

        # Teacher == deepcopy(student) -> teacher encodings are exactly h1/h2.
        # (A diverged EMA teacher would need its own encode pass with its weights.)
        t1, t2 = h1, h2

        # Predictor per view: avoids concatenate/slice VMEM copies (slices are not
        # views on TPU); MXU flops identical.
        def predict(h):
            hb = h.astype(jnp.bfloat16)
            z = jnp.dot(hb, w1, preferred_element_type=f32) + b1
            z = jnp.maximum(z, 0.0).astype(jnp.bfloat16)
            return jnp.dot(z, w2, preferred_element_type=f32) + b2

        p1 = predict(h1)
        p2 = predict(h2)

        def byol(pp, tt):
            # 2 - 2 * <normalize(pp), normalize(tt)>  via a single rsqrt per node.
            s_pt = jnp.sum(pp * tt, axis=-1, keepdims=True)
            s_pp = jnp.sum(pp * pp, axis=-1, keepdims=True)
            s_tt = jnp.sum(tt * tt, axis=-1, keepdims=True)
            return 2.0 - 2.0 * s_pt * jax.lax.rsqrt(s_pp * s_tt + eps)

        loss = byol(p1, t2) + byol(p2, t1)                       # [tm, 1]
        loss = jnp.where(row_mask, loss, 0.0)                    # mask padded rows

        # One lane-dense partial sum per row tile (no masked vst.msk path).
        out_ref[...] = jnp.full((8, LANE), jnp.sum(loss), jnp.float32)


# ------------------------------- JAX wrapper -------------------------------- #

def bgrl_forward(x1, x2, edge_index_v1, edge_index_v2, edge_attr1, edge_attr2,
                 batch, params):
    """Returns the scalar BGRL loss (matches `loss.mean()` in the reference)."""
    del batch  # unused by the reference forward
    n, f_in = x1.shape
    d = params["w_enc"].shape[1]

    n_pad = _round_up(n, LANE)
    f_pad = _round_up(f_in, LANE)
    d_pad = _round_up(d, LANE)

    # --- tile selection -------------------------------------------------------
    # Row tile: prefer num_i >= 2 so the "parallel" axis shards across v7x's 2 TCs.
    tm_cands = tuple(c for c in (512, 256, 128) if 2 * c <= n_pad) or (128,)
    tm = _pick_tile(n_pad, tm_cands)

    def _stage2_fits(tk_):
        a_b = 2 * 2 * tm * tk_ * 2           # A1/A2 tiles, double-buffered, bf16
        xw_b = 2 * 2 * tk_ * d_pad * 2       # XW view1/view2 streams
        acc_b = 2 * tm * d_pad * 4           # f32 accumulators
        wgt_b = 2 * 2 * d_pad * d_pad * 2 + 6 * d_pad * 4 + 2 * 8 * LANE * 4
        return a_b + xw_b + acc_b + wgt_b <= _VMEM_BUDGET

    tk = 128
    for c in (2048, 1024, 512, 256, 128):
        if c <= n_pad and n_pad % c == 0 and _stage2_fits(c):
            tk = c
            break

    num_i = n_pad // tm
    num_k = n_pad // tk

    # --- glue: densify the sparse edge list into a weighted adjacency ---------
    # Built directly at padded size; single scatter pass, single bf16 cast.
    # TODO(synk): sparse scatter / segment-sum has no clean Pallas equivalent; the
    # edge->dense adjacency scatter stays in plain JAX (a block-sparse A formulation
    # is the right answer for large graphs).
    idx = jnp.arange(n)

    def dense_adj(edge_index, edge_attr):
        w = 1.0 + edge_attr.astype(jnp.float32) @ params["w_edge"]      # [E]
        a = jnp.zeros((n_pad, n_pad), jnp.float32)
        a = a.at[edge_index[0], edge_index[1]].add(w)
        a = a.at[idx, idx].add(1.0)                                     # self loops
        return a.astype(jnp.bfloat16)

    a1 = dense_adj(edge_index_v1, edge_attr1)
    a2 = dense_adj(edge_index_v2, edge_attr2)

    # --- padded / bf16 operands (both views stacked once, no extra copies) ----
    xs = jnp.zeros((2 * n_pad, f_pad), jnp.float32)
    xs = xs.at[:n, :f_in].set(x1.astype(jnp.float32))
    xs = xs.at[n_pad:n_pad + n, :f_in].set(x2.astype(jnp.float32))
    xs = xs.astype(jnp.bfloat16)                                        # [2*n_pad, f_pad]

    w_enc = _pad2(params["w_enc"], f_pad, d_pad).astype(jnp.bfloat16)
    b_enc = _pad2(params["b_enc"], 1, d_pad)                            # f32
    w1 = _pad2(params["w1"], d_pad, d_pad).astype(jnp.bfloat16)
    b1 = _pad2(params["b1"], 1, d_pad)
    w2 = _pad2(params["w2"], d_pad, d_pad).astype(jnp.bfloat16)
    b2 = _pad2(params["b2"], 1, d_pad)

    # --- stage 1: batched projection XW = [x1; x2] @ W_enc --------------------
    rows = 2 * n_pad
    tr_cands = tuple(c for c in (1024, 512, 256, 128) if 2 * c <= rows) or (128,)
    tr = _pick_tile(rows, tr_cands)

    tf = 128
    for c in (1024, 512, 256, 128):
        if c <= f_pad and f_pad % c == 0:
            need = 2 * tr * c * 2 + 2 * c * d_pad * 2 + tr * d_pad * 4 + 2 * tr * d_pad * 2
            if need <= _VMEM_BUDGET:
                tf = c
                break

    num_r = rows // tr
    num_f = f_pad // tf

    xw = pl.pallas_call(
        functools.partial(_proj_kernel, nk=num_f),
        out_shape=jax.ShapeDtypeStruct((rows, d_pad), jnp.bfloat16),
        grid=(num_r, num_f),
        in_specs=[pl.BlockSpec((tr, tf), lambda r, kk: (r, kk)),
                  pl.BlockSpec((tf, d_pad), lambda r, kk: (kk, 0))],
        out_specs=pl.BlockSpec((tr, d_pad), lambda r, kk: (r, 0)),
        scratch_shapes=[pltpu.VMEM((tr, d_pad), jnp.float32)],
        compiler_params=pltpu.CompilerParams(
            dimension_semantics=("parallel", "arbitrary")),
    )(xs, w_enc)

    # --- stage 2: aggregation + predictor + symmetric BYOL loss ---------------
    # The stacked xw array is fed twice with different index maps (no HBM slices).
    kernel = functools.partial(_bgrl_main_kernel, tm=tm, n_valid=n,
                               nk=num_k, eps=1e-24)

    partials = pl.pallas_call(
        kernel,
        out_shape=jax.ShapeDtypeStruct((num_i * 8, LANE), jnp.float32),
        grid_spec=pltpu.PrefetchScalarGridSpec(
            num_scalar_prefetch=0,
            grid=(num_i, num_k),
            in_specs=[
                pl.BlockSpec((tm, tk), lambda i, k: (i, k)),                  # A1 tile
                pl.BlockSpec((tm, tk), lambda i, k: (i, k)),                  # A2 tile
                pl.BlockSpec((tk, d_pad), lambda i, k: (k, 0)),               # XW view 1
                pl.BlockSpec((tk, d_pad), lambda i, k, _nk=num_k: (k + _nk, 0)),  # XW view 2
                pl.BlockSpec((1, d_pad), lambda i, k: (0, 0)),                # b_enc
                pl.BlockSpec((d_pad, d_pad), lambda i, k: (0, 0)),            # w1
                pl.BlockSpec((1, d_pad), lambda i, k: (0, 0)),                # b1
                pl.BlockSpec((d_pad, d_pad), lambda i, k: (0, 0)),            # w2
                pl.BlockSpec((1, d_pad), lambda i, k: (0, 0)),                # b2
            ],
            out_specs=pl.BlockSpec((8, LANE), lambda i, k: (i, 0)),
            scratch_shapes=[pltpu.VMEM((tm, d_pad), jnp.float32),
                            pltpu.VMEM((tm, d_pad), jnp.float32)],
        ),
        compiler_params=pltpu.CompilerParams(
            dimension_semantics=("parallel", "arbitrary")),
    )(a1, a2, xw, xw, b_enc, w1, b1, w2, b2)

    # Tiny glue: one partial sum per row tile (broadcast inside its block).
    total = jnp.sum(partials[0::8, 0])
    return total / n                                   # == (loss1 + loss2).mean()


# --------------------------- deterministic init ----------------------------- #

def xavier_uniform(key, shape):
    fan_in, fan_out = shape[0], shape[1]
    limit = jnp.sqrt(6.0 / (fan_in + fan_out))
    return jax.random.uniform(key, shape, jnp.float32, -limit, limit)


def init_params(key, in_dim, emb_dim, edge_dim):
    k = jax.random.split(key, 4)
    return {
        # encoder (student == teacher initially, as in deepcopy)
        "w_enc": xavier_uniform(k[0], (in_dim, emb_dim)),
        "b_enc": jnp.zeros((1, emb_dim), jnp.float32),
        "w_edge": 0.1 * jax.random.normal(k[1], (edge_dim,), jnp.float32),
        # student_predictor: Linear(emb, emb) -> ReLU -> Linear(emb, emb)
        # (init_emb: xavier_uniform weights, zero biases)
        "w1": xavier_uniform(k[2], (emb_dim, emb_dim)),
        "b1": jnp.zeros((1, emb_dim), jnp.float32),
        "w2": xavier_uniform(k[3], (emb_dim, emb_dim)),
        "b2": jnp.zeros((1, emb_dim), jnp.float32),
    }


# ---------------------------------- main ------------------------------------ #

if __name__ == "__main__":
    N, F_IN, EMB, E, EDGE_DIM = 16, 16, 32, 32, 4

    root = jax.random.PRNGKey(0)
    kx1, kx2, ke1, ke2, ka1, ka2, kp = jax.random.split(root, 7)

    x1 = jax.random.normal(kx1, (N, F_IN), jnp.float32)
    x2 = jax.random.normal(kx2, (N, F_IN), jnp.float32)
    edge_index_v1 = jax.random.randint(ke1, (2, E), 0, N, jnp.int32)
    edge_index_v2 = jax.random.randint(ke2, (2, E), 0, N, jnp.int32)
    edge_attr1 = jax.random.normal(ka1, (E, EDGE_DIM), jnp.float32)
    edge_attr2 = jax.random.normal(ka2, (E, EDGE_DIM), jnp.float32)
    batch = jnp.zeros((N,), jnp.int32)

    params = init_params(kp, F_IN, EMB, EDGE_DIM)

    loss = jax.jit(functools.partial(bgrl_forward, params=params))(
        x1, x2, edge_index_v1, edge_index_v2, edge_attr1, edge_attr2, batch)
    jax.block_until_ready(loss)

    assert loss.shape == () and jnp.isfinite(loss)
    print("KERNEL_OK")
</pallas_src>

<mosaic_0001>
module attributes {stable_mosaic.version = 11 : i64} {
  func.func private @main(%arg0: i32) attributes {dimension_semantics = [#tpu.dimension_semantics<core_parallel>], iteration_bounds = array<i64: 2>, tpu.core_type = #tpu.core_type<sc_scalar_subcore>, window_params = []} {
    return
  }
}

module attributes {stable_mosaic.version = 11 : i64} {
  func.func private @main(%arg0: i32) attributes {dimension_semantics = [#tpu.dimension_semantics<core_parallel>], iteration_bounds = array<i64: 2>, tpu.core_type = #tpu.core_type<sc_scalar_subcore>, window_params = []} {
    return
  }
}

module attributes {stable_mosaic.version = 11 : i64} {
  func.func @_proj_kernel(%arg0: i32, %arg1: i32, %arg2: memref<128x128xbf16, #tpu.memory_space<vmem>>, %arg3: memref<128x128xbf16, #tpu.memory_space<vmem>>, %arg4: memref<128x128xbf16, #tpu.memory_space<vmem>>, %arg5: memref<128x128xf32, #tpu.memory_space<vmem>>) attributes {dimension_semantics = [#tpu.dimension_semantics<parallel>, #tpu.dimension_semantics<arbitrary>], iteration_bounds = array<i64: 2, 1>, scalar_prefetch = 0 : i64, scratch_operands = 1 : i64, tpu.core_type = #tpu.core_type<tc>, window_params = [{transform_indices = @transform_0, window_bounds = array<i64: 128, 128>}, {transform_indices = @transform_1, window_bounds = array<i64: 128, 128>}, {transform_indices = @transform_2, window_bounds = array<i64: 128, 128>}]} {
    %c0 = arith.constant 0 : index
    %c0_0 = arith.constant 0 : index
    %0 = vector.load %arg2[%c0, %c0_0] : memref<128x128xbf16, #tpu.memory_space<vmem>>, vector<128x128xbf16>
    %c0_1 = arith.constant 0 : index
    %c0_2 = arith.constant 0 : index
    %1 = vector.load %arg3[%c0_1, %c0_2] : memref<128x128xbf16, #tpu.memory_space<vmem>>, vector<128x128xbf16>
    %cst = arith.constant dense<0.000000e+00> : vector<128x128xf32>
    %2 = tpu.matmul %0, %1, %cst {dimension_numbers = #tpu.dot_dimension_numbers<[1], [0], [0], [1], [0, 0, 1, 1], [], []>} : vector<128x128xbf16>, vector<128x128xbf16>, vector<128x128xf32> -> vector<128x128xf32>
    %c0_i32 = arith.constant 0 : i32
    %3 = arith.cmpi eq, %arg1, %c0_i32 : i32
    %4 = arith.extui %3 : i1 to i32
    %c0_i32_3 = arith.constant 0 : i32
    %5 = arith.cmpi ne, %4, %c0_i32_3 : i32
    scf.if %5 {
      %c0_8 = arith.constant 0 : index
      %c0_9 = arith.constant 0 : index
      %12 = vector.load %arg5[%c0_8, %c0_9] : memref<128x128xf32, #tpu.memory_space<vmem>>, vector<128x128xf32>
      tpu.vector_store %arg5[%c0_8, %c0_9], %2 {strides = array<i32>} : memref<128x128xf32, #tpu.memory_space<vmem>>, vector<128x128xf32>,
    } else {
    }
    %c0_i32_4 = arith.constant 0 : i32
    %6 = arith.cmpi sgt, %arg1, %c0_i32_4 : i32
    %7 = arith.extui %6 : i1 to i32
    %c0_i32_5 = arith.constant 0 : i32
    %8 = arith.cmpi ne, %7, %c0_i32_5 : i32
    scf.if %8 {
      %c0_8 = arith.constant 0 : index
      %c0_9 = arith.constant 0 : index
      %12 = vector.load %arg5[%c0_8, %c0_9] : memref<128x128xf32, #tpu.memory_space<vmem>>, vector<128x128xf32>
      %13 = arith.addf %12, %2 : vector<128x128xf32>
      %c0_10 = arith.constant 0 : index
      %c0_11 = arith.constant 0 : index
      %14 = vector.load %arg5[%c0_10, %c0_11] : memref<128x128xf32, #tpu.memory_space<vmem>>, vector<128x128xf32>
      tpu.vector_store %arg5[%c0_10, %c0_11], %13 {strides = array<i32>} : memref<128x128xf32, #tpu.memory_space<vmem>>, vector<128x128xf32>,
    } else {
    }
    %c0_i32_6 = arith.constant 0 : i32
    %9 = arith.cmpi eq, %arg1, %c0_i32_6 : i32
    %10 = arith.extui %9 : i1 to i32
    %c0_i32_7 = arith.constant 0 : i32
    %11 = arith.cmpi ne, %10, %c0_i32_7 : i32
    scf.if %11 {
      %c0_8 = arith.constant 0 : index
      %c0_9 = arith.constant 0 : index
      %12 = vector.load %arg5[%c0_8, %c0_9] : memref<128x128xf32, #tpu.memory_space<vmem>>, vector<128x128xf32>
      %13 = arith.truncf %12 : vector<128x128xf32> to vector<128x128xbf16>
      %c0_10 = arith.constant 0 : index
      %c0_11 = arith.constant 0 : index
      %14 = vector.load %arg4[%c0_10, %c0_11] : memref<128x128xbf16, #tpu.memory_space<vmem>>, vector<128x128xbf16>
      tpu.vector_store %arg4[%c0_10, %c0_11], %13 {strides = array<i32>} : memref<128x128xbf16, #tpu.memory_space<vmem>>, vector<128x128xbf16>,
    } else {
    }
    return
  }
  func.func @transform_0(%arg0: i32, %arg1: i32) -> (i32, i32) {
    %c0_i32 = arith.constant 0 : i32
    return %arg0, %arg1 : i32, i32
  }
  func.func @transform_1(%arg0: i32, %arg1: i32) -> (i32, i32) {
    %c0_i32 = arith.constant 0 : i32
    %c0_i32_0 = arith.constant 0 : i32
    return %arg1, %c0_i32 : i32, i32
  }
  func.func @transform_2(%arg0: i32, %arg1: i32) -> (i32, i32) {
    %c0_i32 = arith.constant 0 : i32
    %c0_i32_0 = arith.constant 0 : i32
    return %arg0, %c0_i32 : i32, i32
  }
}

module attributes {stable_mosaic.version = 11 : i64} {
  func.func @_bgrl_main_kernel(%arg0: i32, %arg1: i32, %arg2: memref<128x128xbf16, #tpu.memory_space<vmem>>, %arg3: memref<128x128xbf16, #tpu.memory_space<vmem>>, %arg4: memref<128x128xbf16, #tpu.memory_space<vmem>>, %arg5: memref<128x128xbf16, #tpu.memory_space<vmem>>, %arg6: memref<1x128xf32, #tpu.memory_space<vmem>>, %arg7: memref<128x128xbf16, #tpu.memory_space<vmem>>, %arg8: memref<1x128xf32, #tpu.memory_space<vmem>>, %arg9: memref<128x128xbf16, #tpu.memory_space<vmem>>, %arg10: memref<1x128xf32, #tpu.memory_space<vmem>>, %arg11: memref<8x128xf32, #tpu.memory_space<vmem>>, %arg12: memref<128x128xf32, #tpu.memory_space<vmem>>, %arg13: memref<128x128xf32, #tpu.memory_space<vmem>>) attributes {dimension_semantics = [#tpu.dimension_semantics<parallel>, #tpu.dimension_semantics<arbitrary>], iteration_bounds = array<i64: 1, 1>, scalar_prefetch = 0 : i64, scratch_operands = 2 : i64, tpu.core_type = #tpu.core_type<tc>, window_params = [{transform_indices = @transform_0, window_bounds = array<i64: 128, 128>}, {transform_indices = @transform_1, window_bounds = array<i64: 128, 128>}, {transform_indices = @transform_2, window_bounds = array<i64: 128, 128>}, {transform_indices = @transform_3, window_bounds = array<i64: 128, 128>}, {pipeline_mode = #tpu.pipeline_mode<synchronous>, transform_indices = @transform_4, window_bounds = array<i64: 1, 128>}, {pipeline_mode = #tpu.pipeline_mode<synchronous>, transform_indices = @transform_5, window_bounds = array<i64: 128, 128>}, {pipeline_mode = #tpu.pipeline_mode<synchronous>, transform_indices = @transform_6, window_bounds = array<i64: 1, 128>}, {pipeline_mode = #tpu.pipeline_mode<synchronous>, transform_indices = @transform_7, window_bounds = array<i64: 128, 128>}, {pipeline_mode = #tpu.pipeline_mode<synchronous>, transform_indices = @transform_8, window_bounds = array<i64: 1, 128>}, {transform_indices = @transform_9, window_bounds = array<i64: 8, 128>}]} {
    %c128_i32 = arith.constant 128 : i32
    %0 = arith.muli %arg0, %c128_i32 : i32
    %1 = tpu.iota {dimensions = array<i32: 0>} : vector<128x1xi32>
    %2 = vector.broadcast %0 : i32 to vector<128x1xi32>
    %3 = arith.addi %2, %1 : vector<128x1xi32>
    %c16_i32 = arith.constant 16 : i32
    %4 = vector.broadcast %c16_i32 : i32 to vector<128x1xi32>
    %5 = arith.cmpi slt, %3, %4 : vector<128x1xi32>
    %c0 = arith.constant 0 : index
    %c0_0 = arith.constant 0 : index
    %6 = vector.load %arg2[%c0, %c0_0] : memref<128x128xbf16, #tpu.memory_space<vmem>>, vector<128x128xbf16>
    %c0_1 = arith.constant 0 : index
    %c0_2 = arith.constant 0 : index
    %7 = vector.load %arg4[%c0_1, %c0_2] : memref<128x128xbf16, #tpu.memory_space<vmem>>, vector<128x128xbf16>
    %cst = arith.constant dense<0.000000e+00> : vector<128x128xf32>
    %8 = tpu.matmul %6, %7, %cst {dimension_numbers = #tpu.dot_dimension_numbers<[1], [0], [0], [1], [0, 0, 1, 1], [], []>} : vector<128x128xbf16>, vector<128x128xbf16>, vector<128x128xf32> -> vector<128x128xf32>
    %c0_3 = arith.constant 0 : index
    %c0_4 = arith.constant 0 : index
    %9 = vector.load %arg3[%c0_3, %c0_4] : memref<128x128xbf16, #tpu.memory_space<vmem>>, vector<128x128xbf16>
    %c0_5 = arith.constant 0 : index
    %c0_6 = arith.constant 0 : index
    %10 = vector.load %arg5[%c0_5, %c0_6] : memref<128x128xbf16, #tpu.memory_space<vmem>>, vector<128x128xbf16>
    %cst_7 = arith.constant dense<0.000000e+00> : vector<128x128xf32>
    %11 = tpu.matmul %9, %10, %cst_7 {dimension_numbers = #tpu.dot_dimension_numbers<[1], [0], [0], [1], [0, 0, 1, 1], [], []>} : vector<128x128xbf16>, vector<128x128xbf16>, vector<128x128xf32> -> vector<128x128xf32>
    %c0_i32 = arith.constant 0 : i32
    %12 = arith.cmpi eq, %arg1, %c0_i32 : i32
    %13 = arith.extui %12 : i1 to i32
    %c0_i32_8 = arith.constant 0 : i32
    %14 = arith.cmpi ne, %13, %c0_i32_8 : i32
    scf.if %14 {
      %c0_13 = arith.constant 0 : index
      %c0_14 = arith.constant 0 : index
      %21 = vector.load %arg12[%c0_13, %c0_14] : memref<128x128xf32, #tpu.memory_space<vmem>>, vector<128x128xf32>
      tpu.vector_store %arg12[%c0_13, %c0_14], %8 {strides = array<i32>} : memref<128x128xf32, #tpu.memory_space<vmem>>, vector<128x128xf32>,
      %c0_15 = arith.constant 0 : index
      %c0_16 = arith.constant 0 : index
      %22 = vector.load %arg13[%c0_15, %c0_16] : memref<128x128xf32, #tpu.memory_space<vmem>>, vector<128x128xf32>
      tpu.vector_store %arg13[%c0_15, %c0_16], %11 {strides = array<i32>} : memref<128x128xf32, #tpu.memory_space<vmem>>, vector<128x128xf32>,
    } else {
    }
    %c0_i32_9 = arith.constant 0 : i32
    %15 = arith.cmpi sgt, %arg1, %c0_i32_9 : i32
    %16 = arith.extui %15 : i1 to i32
    %c0_i32_10 = arith.constant 0 : i32
    %17 = arith.cmpi ne, %16, %c0_i32_10 : i32
    scf.if %17 {
      %c0_13 = arith.constant 0 : index
      %c0_14 = arith.constant 0 : index
      %21 = vector.load %arg12[%c0_13, %c0_14] : memref<128x128xf32, #tpu.memory_space<vmem>>, vector<128x128xf32>
      %22 = arith.addf %21, %8 : vector<128x128xf32>
      %c0_15 = arith.constant 0 : index
      %c0_16 = arith.constant 0 : index
      %23 = vector.load %arg12[%c0_15, %c0_16] : memref<128x128xf32, #tpu.memory_space<vmem>>, vector<128x128xf32>
      tpu.vector_store %arg12[%c0_15, %c0_16], %22 {strides = array<i32>} : memref<128x128xf32, #tpu.memory_space<vmem>>, vector<128x128xf32>,
      %c0_17 = arith.constant 0 : index
      %c0_18 = arith.constant 0 : index
      %24 = vector.load %arg13[%c0_17, %c0_18] : memref<128x128xf32, #tpu.memory_space<vmem>>, vector<128x128xf32>
      %25 = arith.addf %24, %11 : vector<128x128xf32>
      %c0_19 = arith.constant 0 : index
      %c0_20 = arith.constant 0 : index
      %26 = vector.load %arg13[%c0_19, %c0_20] : memref<128x128xf32, #tpu.memory_space<vmem>>, vector<128x128xf32>
      tpu.vector_store %arg13[%c0_19, %c0_20], %25 {strides = array<i32>} : memref<128x128xf32, #tpu.memory_space<vmem>>, vector<128x128xf32>,
    } else {
    }
    %c0_i32_11 = arith.constant 0 : i32
    %18 = arith.cmpi eq, %arg1, %c0_i32_11 : i32
    %19 = arith.extui %18 : i1 to i32
    %c0_i32_12 = arith.constant 0 : i32
    %20 = arith.cmpi ne, %19, %c0_i32_12 : i32
    scf.if %20 {
      %c0_13 = arith.constant 0 : index
      %c0_14 = arith.constant 0 : index
      %21 = vector.load %arg6[%c0_13, %c0_14] : memref<1x128xf32, #tpu.memory_space<vmem>>, vector<1x128xf32>
      %c0_15 = arith.constant 0 : index
      %c0_16 = arith.constant 0 : index
      %22 = vector.load %arg7[%c0_15, %c0_16] : memref<128x128xbf16, #tpu.memory_space<vmem>>, vector<128x128xbf16>
      %c0_17 = arith.constant 0 : index
      %c0_18 = arith.constant 0 : index
      %23 = vector.load %arg8[%c0_17, %c0_18] : memref<1x128xf32, #tpu.memory_space<vmem>>, vector<1x128xf32>
      %c0_19 = arith.constant 0 : index
      %c0_20 = arith.constant 0 : index
      %24 = vector.load %arg9[%c0_19, %c0_20] : memref<128x128xbf16, #tpu.memory_space<vmem>>, vector<128x128xbf16>
      %c0_21 = arith.constant 0 : index
      %c0_22 = arith.constant 0 : index
      %25 = vector.load %arg10[%c0_21, %c0_22] : memref<1x128xf32, #tpu.memory_space<vmem>>, vector<1x128xf32>
      %c0_23 = arith.constant 0 : index
      %c0_24 = arith.constant 0 : index
      %26 = vector.load %arg12[%c0_23, %c0_24] : memref<128x128xf32, #tpu.memory_space<vmem>>, vector<128x128xf32>
      %27 = vector.broadcast %21 : vector<1x128xf32> to vector<128x128xf32>
      %28 = arith.addf %26, %27 : vector<128x128xf32>
      %cst_25 = arith.constant 0.000000e+00 : f32
      %29 = vector.broadcast %cst_25 : f32 to vector<128x128xf32>
      %30 = arith.maximumf %28, %29 : vector<128x128xf32>
      %c0_26 = arith.constant 0 : index
      %c0_27 = arith.constant 0 : index
      %31 = vector.load %arg13[%c0_26, %c0_27] : memref<128x128xf32, #tpu.memory_space<vmem>>, vector<128x128xf32>
      %32 = vector.broadcast %21 : vector<1x128xf32> to vector<128x128xf32>
      %33 = arith.addf %31, %32 : vector<128x128xf32>
      %cst_28 = arith.constant 0.000000e+00 : f32
      %34 = vector.broadcast %cst_28 : f32 to vector<128x128xf32>
      %35 = arith.maximumf %33, %34 : vector<128x128xf32>
      %36 = arith.truncf %30 : vector<128x128xf32> to vector<128x128xbf16>
      %cst_29 = arith.constant dense<0.000000e+00> : vector<128x128xf32>
      %37 = tpu.matmul %36, %22, %cst_29 {dimension_numbers = #tpu.dot_dimension_numbers<[1], [0], [0], [1], [0, 0, 1, 1], [], []>} : vector<128x128xbf16>, vector<128x128xbf16>, vector<128x128xf32> -> vector<128x128xf32>
      %38 = vector.broadcast %23 : vector<1x128xf32> to vector<128x128xf32>
      %39 = arith.addf %37, %38 : vector<128x128xf32>
      %cst_30 = arith.constant 0.000000e+00 : f32
      %40 = vector.broadcast %cst_30 : f32 to vector<128x128xf32>
      %41 = arith.maximumf %39, %40 : vector<128x128xf32>
      %42 = arith.truncf %41 : vector<128x128xf32> to vector<128x128xbf16>
      %cst_31 = arith.constant dense<0.000000e+00> : vector<128x128xf32>
      %43 = tpu.matmul %42, %24, %cst_31 {dimension_numbers = #tpu.dot_dimension_numbers<[1], [0], [0], [1], [0, 0, 1, 1], [], []>} : vector<128x128xbf16>, vector<128x128xbf16>, vector<128x128xf32> -> vector<128x128xf32>
      %44 = vector.broadcast %25 : vector<1x128xf32> to vector<128x128xf32>
      %45 = arith.addf %43, %44 : vector<128x128xf32>
      %46 = arith.truncf %35 : vector<128x128xf32> to vector<128x128xbf16>
      %cst_32 = arith.constant dense<0.000000e+00> : vector<128x128xf32>
      %47 = tpu.matmul %46, %22, %cst_32 {dimension_numbers = #tpu.dot_dimension_numbers<[1], [0], [0], [1], [0, 0, 1, 1], [], []>} : vector<128x128xbf16>, vector<128x128xbf16>, vector<128x128xf32> -> vector<128x128xf32>
      %48 = vector.broadcast %23 : vector<1x128xf32> to vector<128x128xf32>
      %49 = arith.addf %47, %48 : vector<128x128xf32>
      %cst_33 = arith.constant 0.000000e+00 : f32
      %50 = vector.broadcast %cst_33 : f32 to vector<128x128xf32>
      %51 = arith.maximumf %49, %50 : vector<128x128xf32>
      %52 = arith.truncf %51 : vector<128x128xf32> to vector<128x128xbf16>
      %cst_34 = arith.constant dense<0.000000e+00> : vector<128x128xf32>
      %53 = tpu.matmul %52, %24, %cst_34 {dimension_numbers = #tpu.dot_dimension_numbers<[1], [0], [0], [1], [0, 0, 1, 1], [], []>} : vector<128x128xbf16>, vector<128x128xbf16>, vector<128x128xf32> -> vector<128x128xf32>
      %54 = vector.broadcast %25 : vector<1x128xf32> to vector<128x128xf32>
      %55 = arith.addf %53, %54 : vector<128x128xf32>
      %56 = arith.mulf %45, %35 : vector<128x128xf32>
      %cst_35 = arith.constant dense<0.000000e+00> : vector<128xf32>
      %57 = vector.multi_reduction <add>, %56, %cst_35 [1] : vector<128x128xf32> to vector<128xf32>
      %58 = vector.shape_cast %57 : vector<128xf32> to vector<128x1xf32>
      %59 = arith.mulf %45, %45 : vector<128x128xf32>
      %cst_36 = arith.constant dense<0.000000e+00> : vector<128xf32>
      %60 = vector.multi_reduction <add>, %59, %cst_36 [1] : vector<128x128xf32> to vector<128xf32>
      %61 = vector.shape_cast %60 : vector<128xf32> to vector<128x1xf32>
      %62 = arith.mulf %35, %35 : vector<128x128xf32>
      %cst_37 = arith.constant dense<0.000000e+00> : vector<128xf32>
      %63 = vector.multi_reduction <add>, %62, %cst_37 [1] : vector<128x128xf32> to vector<128xf32>
      %64 = vector.shape_cast %63 : vector<128xf32> to vector<128x1xf32>
      %cst_38 = arith.constant 2.000000e+00 : f32
      %65 = vector.broadcast %cst_38 : f32 to vector<128x1xf32>
      %66 = arith.mulf %65, %58 : vector<128x1xf32>
      %67 = arith.mulf %61, %64 : vector<128x1xf32>
      %cst_39 = arith.constant 1.000000e-24 : f32
      %68 = vector.broadcast %cst_39 : f32 to vector<128x1xf32>
      %69 = arith.addf %67, %68 : vector<128x1xf32>
      %70 = math.rsqrt %69 : vector<128x1xf32>
      %71 = arith.mulf %66, %70 : vector<128x1xf32>
      %cst_40 = arith.constant 2.000000e+00 : f32
      %72 = vector.broadcast %cst_40 : f32 to vector<128x1xf32>
      %73 = arith.subf %72, %71 : vector<128x1xf32>
      %74 = arith.mulf %55, %30 : vector<128x128xf32>
      %cst_41 = arith.constant dense<0.000000e+00> : vector<128xf32>
      %75 = vector.multi_reduction <add>, %74, %cst_41 [1] : vector<128x128xf32> to vector<128xf32>
      %76 = vector.shape_cast %75 : vector<128xf32> to vector<128x1xf32>
      %77 = arith.mulf %55, %55 : vector<128x128xf32>
      %cst_42 = arith.constant dense<0.000000e+00> : vector<128xf32>
      %78 = vector.multi_reduction <add>, %77, %cst_42 [1] : vector<128x128xf32> to vector<128xf32>
      %79 = vector.shape_cast %78 : vector<128xf32> to vector<128x1xf32>
      %80 = arith.mulf %30, %30 : vector<128x128xf32>
      %cst_43 = arith.constant dense<0.000000e+00> : vector<128xf32>
      %81 = vector.multi_reduction <add>, %80, %cst_43 [1] : vector<128x128xf32> to vector<128xf32>
      %82 = vector.shape_cast %81 : vector<128xf32> to vector<128x1xf32>
      %cst_44 = arith.constant 2.000000e+00 : f32
      %83 = vector.broadcast %cst_44 : f32 to vector<128x1xf32>
      %84 = arith.mulf %83, %76 : vector<128x1xf32>
      %85 = arith.mulf %79, %82 : vector<128x1xf32>
      %cst_45 = arith.constant 1.000000e-24 : f32
      %86 = vector.broadcast %cst_45 : f32 to vector<128x1xf32>
      %87 = arith.addf %85, %86 : vector<128x1xf32>
      %88 = math.rsqrt %87 : vector<128x1xf32>
      %89 = arith.mulf %84, %88 : vector<128x1xf32>
      %cst_46 = arith.constant 2.000000e+00 : f32
      %90 = vector.broadcast %cst_46 : f32 to vector<128x1xf32>
      %91 = arith.subf %90, %89 : vector<128x1xf32>
      %92 = arith.addf %73, %91 : vector<128x1xf32>
      %cst_47 = arith.constant 0.000000e+00 : f32
      %93 = vector.broadcast %cst_47 : f32 to vector<128x1xf32>
      %94 = arith.select %5, %92, %93 : vector<128x1xi1>, vector<128x1xf32>
      %95 = vector.shape_cast %94 : vector<128x1xf32> to vector<1x128x1xf32>
      %cst_48 = arith.constant dense<0.000000e+00> : vector<1xf32>
      %96 = vector.multi_reduction <add>, %95, %cst_48 [1, 2] : vector<1x128x1xf32> to vector<1xf32>
      %97 = vector.shape_cast %96 : vector<1xf32> to vector<1x1x1xf32>
      %98 = vector.extract %97[0, 0, 0] : f32 from vector<1x1x1xf32>
      %99 = vector.broadcast %98 : f32 to vector<8x128xf32>
      %c0_49 = arith.constant 0 : index
      %c0_50 = arith.constant 0 : index
      %100 = vector.load %arg11[%c0_49, %c0_50] : memref<8x128xf32, #tpu.memory_space<vmem>>, vector<8x128xf32>
      tpu.vector_store %arg11[%c0_49, %c0_50], %99 {strides = array<i32>} : memref<8x128xf32, #tpu.memory_space<vmem>>, vector<8x128xf32>,
    } else {
    }
    return
  }
  func.func @transform_0(%arg0: i32, %arg1: i32) -> (i32, i32) {
    %c0_i32 = arith.constant 0 : i32
    return %arg0, %arg1 : i32, i32
  }
  func.func @transform_1(%arg0: i32, %arg1: i32) -> (i32, i32) {
    %c0_i32 = arith.constant 0 : i32
    return %arg0, %arg1 : i32, i32
  }
  func.func @transform_2(%arg0: i32, %arg1: i32) -> (i32, i32) {
    %c0_i32 = arith.constant 0 : i32
    %c0_i32_0 = arith.constant 0 : i32
    return %arg1, %c0_i32 : i32, i32
  }
  func.func @transform_3(%arg0: i32, %arg1: i32) -> (i32, i32) {
    %c1_i32 = arith.constant 1 : i32
    %0 = arith.addi %arg1, %c1_i32 : i32
    %c0_i32 = arith.constant 0 : i32
    %c0_i32_0 = arith.constant 0 : i32
    return %0, %c0_i32 : i32, i32
  }
  func.func @transform_4(%arg0: i32, %arg1: i32) -> (i32, i32) {
    %c0_i32 = arith.constant 0 : i32
    %c0_i32_0 = arith.constant 0 : i32
    %c0_i32_1 = arith.constant 0 : i32
    return %c0_i32, %c0_i32_0 : i32, i32
  }
  func.func @transform_5(%arg0: i32, %arg1: i32) -> (i32, i32) {
    %c0_i32 = arith.constant 0 : i32
    %c0_i32_0 = arith.constant 0 : i32
    %c0_i32_1 = arith.constant 0 : i32
    return %c0_i32, %c0_i32_0 : i32, i32
  }
  func.func @transform_6(%arg0: i32, %arg1: i32) -> (i32, i32) {
    %c0_i32 = arith.constant 0 : i32
    %c0_i32_0 = arith.constant 0 : i32
    %c0_i32_1 = arith.constant 0 : i32
    return %c0_i32, %c0_i32_0 : i32, i32
  }
  func.func @transform_7(%arg0: i32, %arg1: i32) -> (i32, i32) {
    %c0_i32 = arith.constant 0 : i32
    %c0_i32_0 = arith.constant 0 : i32
    %c0_i32_1 = arith.constant 0 : i32
    return %c0_i32, %c0_i32_0 : i32, i32
  }
  func.func @transform_8(%arg0: i32, %arg1: i32) -> (i32, i32) {
    %c0_i32 = arith.constant 0 : i32
    %c0_i32_0 = arith.constant 0 : i32
    %c0_i32_1 = arith.constant 0 : i32
    return %c0_i32, %c0_i32_0 : i32, i32
  }
  func.func @transform_9(%arg0: i32, %arg1: i32) -> (i32, i32) {
    %c0_i32 = arith.constant 0 : i32
    %c0_i32_0 = arith.constant 0 : i32
    return %arg0, %c0_i32 : i32, i32
  }
}

</mosaic_0001>

<bundles_post_ra>
// kernel: bgrl_forward.2
= control target key start
LH: loop header
LB: loop body
LE: loop exit
PB: predicated region body
PF: predicated region fallthrough
CT: control target
= control target key end

     0   :  { %s922_s9 = smov 0   ;;  %s924_s10 = smov 0   ;;  %s996_s0 = inlined_call_operand.vmem [shape: bf16[256,128], index: 0, kind: input, shape index: {}]   ;;  %s997_s1 = inlined_call_operand.vmem [shape: bf16[128,128], index: 1, kind: input, shape index: {}]   ;;  %s998_s2 = inlined_call_operand.vmem [shape: bf16[256,128], index: 2, kind: output, shape index: {}]  }
   0x1   :  { %s926_s11 = smov 0  }
   0x2 LB: > { %s24_s12 = sadd.s32 1, %s901_s10  ;;  %p677_p0 = scmp.ge.s32.totalorder %s905_s11, 1  ;;  %s905_s11 = sphi %s926_s11, %s12_s11   ;;  %s901_s10 = sphi %s924_s10, %s1000_s10   ;;  %s897_s9 = sphi %s922_s9, %s999_s9  }
   0x3   : > { %p26_p1 = scmp.ge.s32.totalorder %s24_s12, 2  ;;  %p141_p2 = scmp.lt.s32.totalorder %s905_s11, 3 }
   0x5   : > { %s1002_s12 = smov (%p26_p1, %s24_s12), 0  ;;  %p142_p3 = pnand %p677_p0, %p141_p2 }
   0x6   : > { %v867_v0 = vld [vmem:[%s997_s1] sm:$0xff] (!%p142_p3)   ;;  %s678_s15 = sshll.u32 (!%p142_p3), %s897_s9, 4  ;;  %v868_v1 = vld [vmem:[%s997_s1 + $0x8] sm:$0xff] (!%p142_p3)   ;;  %v869_v2 = vld [vmem:[%s997_s1 + $0x10] sm:$0xff] (!%p142_p3)  }
   0x7   : > { %145 = sbr.rel (%p142_p3) target bundleno = 265 (0x109), region = 28  ;;  %p172_p4 = scmp.lt.s32.totalorder (!%p142_p3), %s678_s15, 31  ;;  %795 = vmatprep.subr.bf16.mxu0 (!%p142_p3), %v867_v0  ;;  %827 = vmatprep.subr.bf16.mxu1 (!%p142_p3), %v867_v0  ;;  %v870_v3 = vld [vmem:[%s997_s1 + $0x18] sm:$0xff] (!%p142_p3)   ;;  %v871_v6 = vld [vmem:[%s997_s1 + $0x20] sm:$0xff] (!%p142_p3)   ;;  %v872_v7 = vld [vmem:[%s997_s1 + $0x28] sm:$0xff] (!%p142_p3)  }
   0x8   : > { %796 = vmatpush3.bf16.msra.mxu0 (!%p142_p3), %v867_v0  ;;  %835 = vmatpush3.bf16.msra.mxu1 (!%p142_p3), %v867_v0  ;;  %v873_v8 = vld [vmem:[%s997_s1 + $0x30] sm:$0xff] (!%p142_p3)   ;;  %v874_v9 = vld [vmem:[%s997_s1 + $0x38] sm:$0xff] (!%p142_p3)  }
   0x9   : > { %797 = vmatprep.subr.bf16.mxu0 (!%p142_p3), %v868_v1  ;;  %828 = vmatprep.subr.bf16.mxu1 (!%p142_p3), %v868_v1 }
   0xc   : > { %798 = vmatpush3.bf16.msra.mxu0 (!%p142_p3), %v868_v1  ;;  %836 = vmatpush3.bf16.msra.mxu1 (!%p142_p3), %v868_v1 }
   0xd   : > { %799 = vmatprep.subr.bf16.mxu0 (!%p142_p3), %v869_v2  ;;  %829 = vmatprep.subr.bf16.mxu1 (!%p142_p3), %v869_v2 }
   0xe   : > { %s1004_s15 = smov (!%p172_p4, %s678_s15), 31 }
   0xf   : > { %s679_s20 = sshll.u32 %s1004_s15, 2 }
  0x10   : > { %s957_s23 = scalar_lea.vmem %s996_s0, %s679_s20  ;;  %800 = vmatpush3.bf16.msra.mxu0 %v869_v2  ;;  %837 = vmatpush3.bf16.msra.mxu1 %v869_v2  ;;  %s190_s8 = scalar_lea.vmem %s998_s2, %s679_s20 }
  0x11   : > { %v875_v4 = vld [vmem:[%s957_s23] sm:$0xff]   ;;  %801 = vmatprep.subr.bf16.mxu0 %v870_v3  ;;  %830 = vmatprep.subr.bf16.mxu1 %v870_v3  ;;  %v877_v10 = vld [vmem:[%s957_s23 + $0x8] sm:$0xff]   ;;  %v879_v12 = vld [vmem:[%s957_s23 + $0x10] sm:$0xff]  }
  0x12   : > { %v876_v5 = vld [vmem:[%s957_s23 + $0x20] sm:$0xff]   ;;  %811 = vmatprep.mubr.bf16.mxu0 %v875_v4  ;;  %v878_v11 = vld [vmem:[%s957_s23 + $0x28] sm:$0xff]   ;;  %v880_v13 = vld [vmem:[%s957_s23 + $0x30] sm:$0xff]  }
  0x13   : > { %819 = vmatprep.mubr.bf16.mxu1 %v876_v5  ;;  %v881_v14 = vld [vmem:[%s957_s23 + $0x18] sm:$0xff]  }
  0x14   : > { %802 = vmatpush3.bf16.msra.mxu0 %v870_v3  ;;  %838 = vmatpush3.bf16.msra.mxu1 %v870_v3  ;;  %v882_v15 = vld [vmem:[%s957_s23 + $0x38] sm:$0xff]  }
  0x15   : > { %803 = vmatprep.subr.bf16.mxu0 %v871_v6  ;;  %831 = vmatprep.subr.bf16.mxu1 %v871_v6 }
  0x18   : > { %804 = vmatpush3.bf16.msra.mxu0 %v871_v6  ;;  %839 = vmatpush3.bf16.msra.mxu1 %v871_v6 }
  0x19   : > { %805 = vmatprep.subr.bf16.mxu0 %v872_v7  ;;  %832 = vmatprep.subr.bf16.mxu1 %v872_v7 }
  0x1c   : > { %806 = vmatpush3.bf16.msra.mxu0 %v872_v7  ;;  %840 = vmatpush3.bf16.msra.mxu1 %v872_v7 }
  0x1d   : > { %807 = vmatprep.subr.bf16.mxu0 %v873_v8  ;;  %833 = vmatprep.subr.bf16.mxu1 %v873_v8 }
  0x20   : > { %808 = vmatpush3.bf16.msra.mxu0 %v873_v8  ;;  %841 = vmatpush3.bf16.msra.mxu1 %v873_v8 }
  0x21   : > { %809 = vmatprep.subr.bf16.mxu0 %v874_v9  ;;  %834 = vmatprep.subr.bf16.mxu1 %v874_v9 }
  0x24   : > { %810 = vmatpush3.bf16.msra.mxu0 %v874_v9  ;;  %842 = vmatpush3.bf16.msra.mxu1 %v874_v9 }
  0x27   : > { %812 = vmatmul.mubr.bf16.vlgmr.msra.gmra.mrb[0].mxu0 %v877_v10  ;;  %820 = vmatmul.mubr.bf16.vlgmr.msra.gmra.mrb[0].mxu1 %v878_v11 }
  0x28   : > { %815 = vmatprep.mubr.bf16.mxu0 %v879_v12  ;;  %823 = vmatprep.mubr.bf16.mxu1 %v880_v13 }
  0x2f   : > { %816 = vmatmul.mubr.bf16.gmra.mrb[4].mxu0 %v881_v14  ;;  %824 = vmatmul.mubr.bf16.gmra.mrb[4].mxu1 %v882_v15 }
  0xfa   : > { %v813_v16 = vpop.f32.mrb[0].mxu0  ;;  %v821_v17 = vpop.f32.mrb[0].mxu1 }
  0xfb   : > { %v355_v18 = vpop.f32.mrb[1].mxu0  ;;  %v387_v19 = vpop.f32.mrb[1].mxu1 }
  0xfc   : > { %v814_v20 = vpop.f32.mrb[2].mxu0  ;;  %v822_v21 = vpop.f32.mrb[2].mxu1 }
  0xfd   : > { %v740_v22 = vpack.c.bf16 %v814_v20, %v813_v16  ;;  %v760_v23 = vpack.c.bf16 %v822_v21, %v821_v17  ;;  %v358_v24 = vpop.f32.mrb[3].mxu0  ;;  %v390_v25 = vpop.f32.mrb[3].mxu1 }
  0xfe   : > { %v735_v26 = vpack.c.bf16 %v358_v24, %v355_v18  ;;  %v755_v27 = vpack.c.bf16 %v390_v25, %v387_v19 }
  0xff   : > { %772 = vst [vmem:[%s190_s8 + $0x8] sm:$0xff] %v740_v22   ;;  %776 = vst [vmem:[%s190_s8 + $0x28] sm:$0xff] %v760_v23  }
 0x100   : > { %736 = vst [vmem:[%s190_s8] sm:$0xff] %v735_v26   ;;  %775 = vst [vmem:[%s190_s8 + $0x20] sm:$0xff] %v755_v27  }
 0x102   : > { %v817_v28 = vpop.f32.mrb[4].mxu0  ;;  %v825_v29 = vpop.f32.mrb[4].mxu1 }
 0x103   : > { %v371_v30 = vpop.f32.mrb[5].mxu0  ;;  %v403_v31 = vpop.f32.mrb[5].mxu1 }
 0x104   : > { %v818_v32 = vpop.f32.mrb[6].mxu0  ;;  %v826_v33 = vpop.f32.mrb[6].mxu1 }
 0x105   : > { %v750_v34 = vpack.c.bf16 %v818_v32, %v817_v28  ;;  %v770_v35 = vpack.c.bf16 %v826_v33, %v825_v29  ;;  %v374_v36 = vpop.f32.mrb[7].mxu0  ;;  %v406_v37 = vpop.f32.mrb[7].mxu1 }
 0x106   : > { %v745_v38 = vpack.c.bf16 %v374_v36, %v371_v30  ;;  %v765_v39 = vpack.c.bf16 %v406_v37, %v403_v31 }
 0x107   : > { %774 = vst [vmem:[%s190_s8 + $0x18] sm:$0xff] %v750_v34   ;;  %778 = vst [vmem:[%s190_s8 + $0x38] sm:$0xff] %v770_v35  }
 0x108   : > { %773 = vst [vmem:[%s190_s8 + $0x10] sm:$0xff] %v745_v38   ;;  %777 = vst [vmem:[%s190_s8 + $0x30] sm:$0xff] %v765_v39  }
 0x109 PF: > { %s12_s11 = sadd.s32 1, %s905_s11   ;;  %s999_s9 = smov %s901_s10 }
 0x10a   : > { %p9_p5 = scmp.ge.s32.totalorder %s12_s11, 4   ;;  %s1000_s10 = smov %s1002_s12 }
 0x10c   :  { %11 = sbr.rel (!%p9_p5) target bundleno = 2 (0x2), region = 73 }

// kernel: bgrl_forward.3
= control target key start
LH: loop header
LB: loop body
LE: loop exit
PB: predicated region body
PF: predicated region fallthrough
CT: control target
= control target key end

     0   :  { %vm1904_vm0 = vcmask 7168   ;;  %s2777_s2 = inlined_call_operand.vmem [shape: bf16[256,128], index: 2, kind: input, shape index: {}, may-alias: {2,3}]   ;;  %s2778_s3 = inlined_call_operand.vmem [shape: bf16[256,128], index: 3, kind: input, shape index: {}, may-alias: {2,3}]   ;;  %s2779_s0 = inlined_call_operand.vmem [shape: bf16[128,128], index: 0, kind: input, shape index: {}]   ;;  %s2780_s1 = inlined_call_operand.vmem [shape: bf16[128,128], index: 1, kind: input, shape index: {}]   ;;  %s2781_s5 = inlined_call_operand.vmem [shape: bf16[128,128], index: 5, kind: input, shape index: {}]   ;;  %s2782_s4 = inlined_call_operand.vmem [shape: f32[1,128], index: 4, kind: input, shape index: {}, may-alias: {4,6,8}]   ;;  %s2783_s7 = inlined_call_operand.vmem [shape: bf16[128,128], index: 7, kind: input, shape index: {}]   ;;  %s2784_s6 = inlined_call_operand.vmem [shape: f32[1,128], index: 6, kind: input, shape index: {}, may-alias: {4,6,8}]   ;;  %s2785_s8 = inlined_call_operand.vmem [shape: f32[1,128], index: 8, kind: input, shape index: {}, may-alias: {4,6,8}]   ;;  %s2786_s9 = inlined_call_operand.vmem [shape: f32[8,128], index: 9, kind: output, shape index: {}]  }
   0x1   :  { %v2314_v0 = vld [vmem:[%s2777_s2] sm:$0xff]   ;;  %v2315_v1 = vld [vmem:[%s2777_s2 + $0x8] sm:$0xff]   ;;  %v2316_v2 = vld [vmem:[%s2777_s2 + $0x10] sm:$0xff]  }
   0x2   :  { %2120 = vmatprep.subr.bf16.mxu0 %v2314_v0  ;;  %v2321_v3 = vld [vmem:[%s2778_s3 + $0x40] sm:$0xff]   ;;  %v2317_v4 = vld [vmem:[%s2777_s2 + $0x18] sm:$0xff]   ;;  %v2324_v6 = vld [vmem:[%s2778_s3 + $0x48] sm:$0xff]  }
   0x3   :  { %2121 = vmatpush3.bf16.msra.mxu0 %v2314_v0  ;;  %2152 = vmatprep.subr.bf16.mxu1 %v2321_v3  ;;  %v2323_v5 = vld [vmem:[%s2779_s0] sm:$0xff]   ;;  %v2326_v8 = vld [vmem:[%s2778_s3 + $0x50] sm:$0xff]   ;;  %v2328_v9 = vld [vmem:[%s2778_s3 + $0x58] sm:$0xff]  }
   0x4   :  { %2122 = vmatprep.subr.bf16.mxu0 %v2315_v1  ;;  %2153 = vmatpush3.bf16.msra.mxu1 %v2321_v3  ;;  %v2318_v7 = vld [vmem:[%s2777_s2 + $0x20] sm:$0xff]   ;;  %v2319_v10 = vld [vmem:[%s2777_s2 + $0x28] sm:$0xff]   ;;  %v2320_v12 = vld [vmem:[%s2777_s2 + $0x30] sm:$0xff]  }
   0x5   :  { %2136 = vmatprep.mubr.bf16.mxu0 %v2323_v5  ;;  %2154 = vmatprep.subr.bf16.mxu1 %v2324_v6  ;;  %v2330_v11 = vld [vmem:[%s2778_s3 + $0x60] sm:$0xff]   ;;  %v2322_v13 = vld [vmem:[%s2777_s2 + $0x38] sm:$0xff]   ;;  %v2332_v14 = vld [vmem:[%s2778_s3 + $0x68] sm:$0xff]  }
   0x6   :  { %v2338_v15 = vld [vmem:[%s2780_s1] sm:$0xff]   ;;  %v2334_v16 = vld [vmem:[%s2778_s3 + $0x70] sm:$0xff]   ;;  %v2325_v17 = vld [vmem:[%s2779_s0 + $0x8] sm:$0xff]  }
   0x7   :  { %2123 = vmatpush3.bf16.msra.mxu0 %v2315_v1  ;;  %2168 = vmatprep.mubr.bf16.mxu1 %v2338_v15  ;;  %v2477_v18 = vld [vmem:[%s2781_s5] sm:$0xff]   ;;  %v2327_v19 = vld [vmem:[%s2779_s0 + $0x10] sm:$0xff]   ;;  %v2336_v20 = vld [vmem:[%s2778_s3 + $0x78] sm:$0xff]  }
   0x8   :  { %2124 = vmatprep.subr.bf16.mxu0 %v2316_v2  ;;  %2155 = vmatpush3.bf16.msra.mxu1 %v2324_v6  ;;  %v2488_v21 = vld [vmem:[%s2781_s5 + $0x8] sm:$0xff]   ;;  %v2499_v23 = vld [vmem:[%s2781_s5 + $0x10] sm:$0xff]   ;;  %v2329_v24 = vld [vmem:[%s2779_s0 + $0x18] sm:$0xff]  }
   0x9   :  { %2156 = vmatprep.subr.bf16.mxu1 %v2326_v8  ;;  %v2339_v22 = vld [vmem:[%s2780_s1 + $0x8] sm:$0xff]   ;;  %v2331_v25 = vld [vmem:[%s2779_s0 + $0x20] sm:$0xff]   ;;  %v2512_v26 = vld [vmem:[%s2781_s5 + $0x18] sm:$0xff]  }
   0xa   :  { %v2519_v27 = vld [vmem:[%s2781_s5 + $0x20] sm:$0xff]   ;;  %v2333_v28 = vld [vmem:[%s2779_s0 + $0x28] sm:$0xff]   ;;  %v2335_v29 = vld [vmem:[%s2779_s0 + $0x30] sm:$0xff]  }
   0xb   :  { %2125 = vmatpush3.bf16.msra.mxu0 %v2316_v2  ;;  %v2532_v30 = vld [vmem:[%s2781_s5 + $0x28] sm:$0xff]   ;;  %v2337_v31 = vld [vmem:[%s2779_s0 + $0x38] sm:$0xff]   ;;  %v2543_v32 = vld [vmem:[%s2781_s5 + $0x30] sm:$0xff]  }
   0xc   :  { %2126 = vmatprep.subr.bf16.mxu0 %v2317_v4  ;;  %2157 = vmatpush3.bf16.msra.mxu1 %v2326_v8  ;;  %v2550_v33 = vld [vmem:[%s2781_s5 + $0x38] sm:$0xff]   ;;  %v2348_v34 = vld [vmem:[%s2780_s1 + $0x10] sm:$0xff]   ;;  %v2564_v36 = vld [vmem:[%s2782_s4] ss:$0 sm:$0xff] }
   0xd   :  { %2158 = vmatprep.subr.bf16.mxu1 %v2328_v9  ;;  %v2349_v35 = vld [vmem:[%s2780_s1 + $0x18] sm:$0xff]  }
   0xf   :  { %2127 = vmatpush3.bf16.msra.mxu0 %v2317_v4 }
  0x10   :  { %2128 = vmatprep.subr.bf16.mxu0 %v2318_v7  ;;  %2159 = vmatpush3.bf16.msra.mxu1 %v2328_v9 }
  0x11   :  { %2160 = vmatprep.subr.bf16.mxu1 %v2330_v11 }
  0x13   :  { %2129 = vmatpush3.bf16.msra.mxu0 %v2318_v7 }
  0x14   :  { %2130 = vmatprep.subr.bf16.mxu0 %v2319_v10  ;;  %2161 = vmatpush3.bf16.msra.mxu1 %v2330_v11 }
  0x15   :  { %2162 = vmatprep.subr.bf16.mxu1 %v2332_v14 }
  0x17   :  { %2131 = vmatpush3.bf16.msra.mxu0 %v2319_v10 }
  0x18   :  { %2132 = vmatprep.subr.bf16.mxu0 %v2320_v12  ;;  %2163 = vmatpush3.bf16.msra.mxu1 %v2332_v14 }
  0x19   :  { %2164 = vmatprep.subr.bf16.mxu1 %v2334_v16 }
  0x1b   :  { %2133 = vmatpush3.bf16.msra.mxu0 %v2320_v12 }
  0x1c   :  { %2134 = vmatprep.subr.bf16.mxu0 %v2322_v13  ;;  %2165 = vmatpush3.bf16.msra.mxu1 %v2334_v16 }
  0x1d   :  { %2166 = vmatprep.subr.bf16.mxu1 %v2336_v20 }
  0x1f   :  { %2135 = vmatpush3.bf16.msra.mxu0 %v2322_v13 }
  0x20   :  { %2184 = vmatprep.subr.bf16.mxu0 %v2477_v18  ;;  %2167 = vmatpush3.bf16.msra.mxu1 %v2336_v20 }
  0x22   :  { %2137 = vmatmul.mubr.bf16.vlgmr.msra.gmra.mrb[0].mxu0 %v2325_v17 }
  0x23   :  { %2140 = vmatprep.mubr.bf16.mxu0 %v2327_v19  ;;  %2185 = vmatpush3.bf16.msra.mxu0 %v2477_v18 }
  0x24   :  { %2186 = vmatprep.subr.bf16.mxu0 %v2488_v21  ;;  %2169 = vmatmul.mubr.bf16.vlgmr.msra.gmra.mrb[0].mxu1 %v2339_v22 }
  0x25   :  { %2172 = vmatprep.mubr.bf16.mxu1 %v2348_v34 }
  0x27   :  { %2187 = vmatpush3.bf16.msra.mxu0 %v2488_v21 }
  0x28   :  { %2188 = vmatprep.subr.bf16.mxu0 %v2499_v23 }
  0x2a   :  { %2141 = vmatmul.mubr.bf16.gmra.mrb[4].mxu0 %v2329_v24 }
  0x2b   :  { %2144 = vmatprep.mubr.bf16.mxu0 %v2331_v25  ;;  %2189 = vmatpush3.bf16.msra.mxu0 %v2499_v23 }
  0x2c   :  { %2190 = vmatprep.subr.bf16.mxu0 %v2512_v26  ;;  %2173 = vmatmul.mubr.bf16.gmra.mrb[4].mxu1 %v2349_v35 }
  0x2f   :  { %2191 = vmatpush3.bf16.msra.mxu0 %v2512_v26 }
  0x30   :  { %2192 = vmatprep.subr.bf16.mxu0 %v2519_v27 }
  0x32   :  { %2145 = vmatmul.mubr.bf16.gmra.mrb[8].mxu0 %v2333_v28 }
  0x33   :  { %2148 = vmatprep.mubr.bf16.mxu0 %v2335_v29  ;;  %2193 = vmatpush3.bf16.msra.mxu0 %v2519_v27 }
  0x34   :  { %2194 = vmatprep.subr.bf16.mxu0 %v2532_v30 }
  0x37   :  { %2195 = vmatpush3.bf16.msra.mxu0 %v2532_v30 }
  0x38   :  { %2196 = vmatprep.subr.bf16.mxu0 %v2543_v32 }
  0x3a   :  { %2149 = vmatmul.mubr.bf16.gmra.mrb[12].mxu0 %v2337_v31 }
  0x3b   :  { %2197 = vmatpush3.bf16.msra.mxu0 %v2543_v32 }
  0x3c   :  { %2198 = vmatprep.subr.bf16.mxu0 %v2550_v33 }
  0x3f   :  { %2199 = vmatpush3.bf16.msra.mxu0 %v2550_v33 }
  0x40   :  { %2248 = vmatprep.subr.bf16.mxu0 %v2477_v18 }
  0xf5   :  { %v2138_v37 = vpop.f32.mrb[0].mxu0 }
  0xf6   :  { %v754_v38 = vadd.f32 %v2138_v37, %v2564_v36  ;;  %v268_v39 = vpop.f32.mrb[1].mxu0 }
  0xf7   :  { %v752_v40 = vadd.f32 %v2564_v36, %v268_v39  ;;  %v2139_v41 = vpop.f32.mrb[2].mxu0  ;;  %v2170_v50 = vpop.f32.mrb[0].mxu1 }
  0xf8   :  { %v755_v42 = vadd.f32 %v2139_v41, %v2564_v36  ;;  %v271_v43 = vpop.f32.mrb[3].mxu0  ;;  %v770_v45 = vmax.f32 %v754_v38, 0.0  ;;  %v802_v53 = vadd.f32 %v2170_v50, %v2564_v36  ;;  %v493_v54 = vpop.f32.mrb[1].mxu1 }
  0xf9   :  { %v753_v44 = vadd.f32 %v2564_v36, %v271_v43  ;;  %v2570_v47 = vmax.f32 %v752_v40, 0.0  ;;  %v800_v57 = vadd.f32 %v2564_v36, %v493_v54  ;;  %v2171_v58 = vpop.f32.mrb[2].mxu1  ;;  %v2634_v54 = vld [vmem:[%s2783_s7 + $0x8] sm:$0xff]  }
  0xfa   :  { %v771_v46 = vmax.f32 %v755_v42, 0.0  ;;  %v818_v61 = vmax.f32 %v802_v53, 0.0  ;;  %v803_v62 = vadd.f32 %v2171_v58, %v2564_v36  ;;  %v496_v63 = vpop.f32.mrb[3].mxu1  ;;  %v2352_v53 = vld [vmem:[%s2780_s1 + $0x30] sm:$0xff]  }
  0xfb   :  { %v2572_v48 = vmax.f32 %v753_v44, 0.0  ;;  %v2582_v2 = vmax.f32 %v800_v57, 0.0  ;;  %v801_v3 = vadd.f32 %v2564_v36, %v496_v63  ;;  %v2669_v57 = vld [vmem:[%s2783_s7 + $0x28] sm:$0xff]   ;;  %v2677_v58 = vld [vmem:[%s2783_s7 + $0x30] sm:$0xff]  }
  0xfc   :  { %v833_v49 = vpack.c.bf16 %v771_v46, %v770_v45  ;;  %v819_v5 = vmax.f32 %v803_v62, 0.0 }
  0xfd   :  { %v2142_v51 = vpop.f32.mrb[4].mxu0  ;;  %v832_v52 = vpack.c.bf16 %v2572_v48, %v2570_v47  ;;  %v2588_v8 = vmax.f32 %v801_v3, 0.0  ;;  %v1488_v9 = vmul.f32 %v2582_v2, %v2582_v2 }
  0xfe   :  { %v758_v55 = vadd.f32 %v2142_v51, %v2564_v36  ;;  %v284_v56 = vpop.f32.mrb[5].mxu0  ;;  %v2592_v12 = vpack.c.bf16 %v819_v5, %v818_v61 }
  0xff   :  { %v756_v59 = vadd.f32 %v2564_v36, %v284_v56  ;;  %v2143_v60 = vpop.f32.mrb[6].mxu0  ;;  %2200 = vmatprep.mubr.bf16.mxu0 %v832_v52  ;;  %1504 = vadd.xlane.f32.xlu1 %v1488_v9  ;;  %v1489_v14 = vmul.f32 %v2588_v8, %v2588_v8  ;;  %v1166_v51 = vpack.c.bf16 %v2588_v8, %v2582_v2  ;;  %v2350_v52 = vld [vmem:[%s2780_s1 + $0x20] sm:$0xff]   ;;  %v2655_v56 = vld [vmem:[%s2783_s7 + $0x18] sm:$0xff]  }
 0x100   :  { %v759_v0 = vadd.f32 %v2143_v60, %v2564_v36  ;;  %v287_v1 = vpop.f32.mrb[7].mxu0  ;;  %2201 = vmatmul.mubr.bf16.vlgmr.msra.gmra.mrb[16].mxu0 %v833_v49  ;;  %v774_v6 = vmax.f32 %v758_v55, 0.0  ;;  %2176 = vmatprep.mubr.bf16.mxu1 %v2350_v52  ;;  %v2353_v55 = vld [vmem:[%s2780_s1 + $0x38] sm:$0xff]   ;;  %v2174_v60 = vpop.f32.mrb[4].mxu1 }
 0x101   :  { %v757_v4 = vadd.f32 %v2564_v36, %v287_v1  ;;  %2249 = vmatpush3.bf16.msra.mxu0 %v2477_v18  ;;  %v772_v10 = vmax.f32 %v756_v59, 0.0  ;;  %v2684_v59 = vld [vmem:[%s2783_s7 + $0x38] sm:$0xff]   ;;  %v806_v61 = vadd.f32 %v2174_v60, %v2564_v36  ;;  %v509_v62 = vpop.f32.mrb[5].mxu1 }
 0x102   :  { %v775_v7 = vmax.f32 %v759_v0, 0.0  ;;  %2250 = vmatprep.subr.bf16.mxu0 %v2488_v21  ;;  %v804_v63 = vadd.f32 %v2564_v36, %v509_v62  ;;  %v2175_v0 = vpop.f32.mrb[6].mxu1 }
 0x103   :  { %v773_v11 = vmax.f32 %v757_v4, 0.0  ;;  %1506 = vadd.xlane.f32.xlu1 %v1489_v14  ;;  %v822_v1 = vmax.f32 %v806_v61, 0.0  ;;  %v807_v3 = vadd.f32 %v2175_v0, %v2564_v36  ;;  %v512_v4 = vpop.f32.mrb[7].mxu1 }
 0x104   :  { %v835_v13 = vpack.c.bf16 %v775_v7, %v774_v6  ;;  %v820_v5 = vmax.f32 %v804_v63, 0.0  ;;  %v805_v6 = vadd.f32 %v2564_v36, %v512_v4 }
 0x105   :  { %v834_v15 = vpack.c.bf16 %v773_v11, %v772_v10  ;;  %2251 = vmatpush3.bf16.msra.mxu0 %v2488_v21  ;;  %v2146_v16 = vpop.f32.mrb[8].mxu0  ;;  %v823_v7 = vmax.f32 %v807_v3, 0.0 }
 0x106   :  { %v762_v17 = vadd.f32 %v2146_v16, %v2564_v36  ;;  %v300_v18 = vpop.f32.mrb[9].mxu0  ;;  %2252 = vmatprep.subr.bf16.mxu0 %v2499_v23  ;;  %v821_v9 = vmax.f32 %v805_v6, 0.0 }
 0x107   :  { %v760_v19 = vadd.f32 %v2564_v36, %v300_v18  ;;  %v2147_v20 = vpop.f32.mrb[10].mxu0  ;;  %2204 = vmatprep.mubr.bf16.mxu0 %v834_v15  ;;  %v1169_v10 = vpack.c.bf16 %v823_v7, %v822_v1 }
 0x108   :  { %v763_v22 = vadd.f32 %v2147_v20, %v2564_v36  ;;  %v303_v24 = vpop.f32.mrb[11].mxu0  ;;  %2205 = vmatmul.mubr.bf16.gmra.mrb[20].mxu0 %v835_v13  ;;  %v778_v21 = vmax.f32 %v762_v17, 0.0  ;;  %v1168_v11 = vpack.c.bf16 %v821_v9, %v820_v5 }
 0x109   :  { %v761_v25 = vadd.f32 %v2564_v36, %v303_v24  ;;  %2253 = vmatpush3.bf16.msra.mxu0 %v2499_v23  ;;  %v776_v29 = vmax.f32 %v760_v19, 0.0 }
 0x10a   :  { %v779_v28 = vmax.f32 %v763_v22, 0.0  ;;  %2254 = vmatprep.subr.bf16.mxu0 %v2512_v26 }
 0x10b   :  { %v777_v31 = vmax.f32 %v761_v25, 0.0 }
 0x10c   :  { %v837_v34 = vpack.c.bf16 %v779_v28, %v778_v21 }
 0x10d   :  { %v836_v35 = vpack.c.bf16 %v777_v31, %v776_v29  ;;  %2255 = vmatpush3.bf16.msra.mxu0 %v2512_v26  ;;  %v2150_v37 = vpop.f32.mrb[12].mxu0 }
 0x10e   :  { %v766_v38 = vadd.f32 %v2150_v37, %v2564_v36  ;;  %v316_v39 = vpop.f32.mrb[13].mxu0  ;;  %2256 = vmatprep.subr.bf16.mxu0 %v2519_v27 }
 0x10f   :  { %v764_v40 = vadd.f32 %v2564_v36, %v316_v39  ;;  %v2151_v41 = vpop.f32.mrb[14].mxu0  ;;  %2208 = vmatprep.mubr.bf16.mxu0 %v836_v35 }
 0x110   :  { %v767_v23 = vadd.f32 %v2151_v41, %v2564_v36  ;;  %v319_v42 = vpop.f32.mrb[15].mxu0  ;;  %2209 = vmatmul.mubr.bf16.gmra.mrb[24].mxu0 %v837_v34  ;;  %v782_v44 = vmax.f32 %v766_v38, 0.0 }
 0x111   :  { %v765_v43 = vadd.f32 %v2564_v36, %v319_v42  ;;  %2257 = vmatpush3.bf16.msra.mxu0 %v2519_v27  ;;  %v780_v45 = vmax.f32 %v764_v40, 0.0  ;;  %v2351_v27 = vld [vmem:[%s2780_s1 + $0x28] sm:$0xff]  }
 0x112   :  { %v783_v26 = vmax.f32 %v767_v23, 0.0  ;;  %2258 = vmatprep.subr.bf16.mxu0 %v2532_v30  ;;  %2177 = vmatmul.mubr.bf16.gmra.mrb[8].mxu1 %v2351_v27 }
 0x113   :  { %v781_v46 = vmax.f32 %v765_v43, 0.0  ;;  %2180 = vmatprep.mubr.bf16.mxu1 %v2352_v53 }
 0x114   :  { %v839_v49 = vpack.c.bf16 %v783_v26, %v782_v44 }
 0x115   :  { %v838_v50 = vpack.c.bf16 %v781_v46, %v780_v45  ;;  %2259 = vmatpush3.bf16.msra.mxu0 %v2532_v30  ;;  %v2628_v30 = vld [vmem:[%s2783_s7] sm:$0xff]  }
 0x116   :  { %2260 = vmatprep.subr.bf16.mxu0 %v2543_v32  ;;  %2216 = vmatprep.subr.bf16.mxu1 %v2628_v30 }
 0x117   :  { %2212 = vmatprep.mubr.bf16.mxu0 %v838_v50  ;;  %2217 = vmatpush3.bf16.msra.mxu1 %v2628_v30 }
 0x118   :  { %2213 = vmatmul.mubr.bf16.gmra.mrb[28].mxu0 %v839_v49  ;;  %2218 = vmatprep.subr.bf16.mxu1 %v2634_v54 }
 0x119   :  { %2261 = vmatpush3.bf16.msra.mxu0 %v2543_v32  ;;  %2264 = vmatprep.mubr.bf16.mxu0 %v1166_v51  ;;  %v2647_v32 = vld [vmem:[%s2783_s7 + $0x10] sm:$0xff]  }
 0x11a   :  { %2262 = vmatprep.subr.bf16.mxu0 %v2550_v33  ;;  %2181 = vmatmul.mubr.bf16.gmra.mrb[12].mxu1 %v2353_v55 }
 0x11b   :  { %2219 = vmatpush3.bf16.msra.mxu1 %v2634_v54 }
 0x11c   :  { %2220 = vmatprep.subr.bf16.mxu1 %v2647_v32 }
 0x11d   :  { %2263 = vmatpush3.bf16.msra.mxu0 %v2550_v33  ;;  %v2662_v33 = vld [vmem:[%s2783_s7 + $0x20] sm:$0xff]  }
 0x11f   :  { %2221 = vmatpush3.bf16.msra.mxu1 %v2647_v32 }
 0x120   :  { %2265 = vmatmul.mubr.bf16.vlgmr.msra.gmra.mrb[32].mxu0 %v2592_v12  ;;  %2222 = vmatprep.subr.bf16.mxu1 %v2655_v56  ;;  %v2696_v12 = vld [vmem:[%s2784_s6] ss:$0 sm:$0xff] }
 0x121   :  { %2268 = vmatprep.mubr.bf16.mxu0 %v1168_v11 }
 0x123   :  { %2223 = vmatpush3.bf16.msra.mxu1 %v2655_v56 }
 0x124   :  { %2224 = vmatprep.subr.bf16.mxu1 %v2662_v33 }
 0x127   :  { %2225 = vmatpush3.bf16.msra.mxu1 %v2662_v33 }
 0x128   :  { %2226 = vmatprep.subr.bf16.mxu1 %v2669_v57  ;;  %2269 = vmatmul.mubr.bf16.gmra.mrb[36].mxu0 %v1169_v10 }
 0x12b   :  { %2227 = vmatpush3.bf16.msra.mxu1 %v2669_v57 }
 0x12c   :  { %2228 = vmatprep.subr.bf16.mxu1 %v2677_v58 }
 0x12f   :  { %2229 = vmatpush3.bf16.msra.mxu1 %v2677_v58 }
 0x130   :  { %2230 = vmatprep.subr.bf16.mxu1 %v2684_v59 }
 0x133   :  { %2231 = vmatpush3.bf16.msra.mxu1 %v2684_v59 }
 0x134   :  { %2280 = vmatprep.subr.bf16.mxu1 %v2628_v30 }
 0x1d3   :  { %v2202_v13 = vpop.f32.mrb[16].mxu0 }
 0x1d4   :  { %v937_v14 = vadd.f32 %v2202_v13, %v2696_v12  ;;  %v928_v15 = vpop.f32.mrb[17].mxu0 }
 0x1d5   :  { %v929_v16 = vadd.f32 %v2696_v12, %v928_v15  ;;  %v2203_v17 = vpop.f32.mrb[18].mxu0 }
 0x1d6   :  { %v940_v18 = vadd.f32 %v2203_v17, %v2696_v12  ;;  %v931_v19 = vpop.f32.mrb[19].mxu0  ;;  %v993_v22 = vmax.f32 %v937_v14, 0.0 }
 0x1d7   :  { %v932_v20 = vadd.f32 %v2696_v12, %v931_v19  ;;  %v991_v25 = vmax.f32 %v929_v16, 0.0 }
 0x1d8   :  { %v994_v24 = vmax.f32 %v940_v18, 0.0 }
 0x1d9   :  { %v992_v21 = vmax.f32 %v932_v20, 0.0 }
 0x1da   :  { %v1008_v28 = vpack.c.bf16 %v994_v24, %v993_v22 }
 0x1db   :  { %v1007_v29 = vpack.c.bf16 %v992_v21, %v991_v25  ;;  %v2206_v31 = vpop.f32.mrb[20].mxu0 }
 0x1dc   :  { %v953_v34 = vadd.f32 %v2206_v31, %v2696_v12  ;;  %v944_v35 = vpop.f32.mrb[21].mxu0 }
 0x1dd   :  { %v945_v37 = vadd.f32 %v2696_v12, %v944_v35  ;;  %v2207_v38 = vpop.f32.mrb[22].mxu0  ;;  %2232 = vmatprep.mubr.bf16.mxu1 %v1007_v29 }
 0x1de   :  { %v956_v39 = vadd.f32 %v2207_v38, %v2696_v12  ;;  %v947_v40 = vpop.f32.mrb[23].mxu0  ;;  %2233 = vmatmul.mubr.bf16.vlgmr.msra.gmra.mrb[16].mxu1 %v1008_v28  ;;  %v997_v23 = vmax.f32 %v953_v34, 0.0 }
 0x1df   :  { %v948_v41 = vadd.f32 %v2696_v12, %v947_v40  ;;  %2281 = vmatpush3.bf16.msra.mxu1 %v2628_v30  ;;  %v995_v43 = vmax.f32 %v945_v37, 0.0 }
 0x1e0   :  { %v998_v42 = vmax.f32 %v956_v39, 0.0  ;;  %2282 = vmatprep.subr.bf16.mxu1 %v2634_v54 }
 0x1e1   :  { %v996_v44 = vmax.f32 %v948_v41, 0.0 }
 0x1e2   :  { %v1010_v26 = vpack.c.bf16 %v998_v42, %v997_v23 }
 0x1e3   :  { %v1009_v45 = vpack.c.bf16 %v996_v44, %v995_v43  ;;  %2283 = vmatpush3.bf16.msra.mxu1 %v2634_v54  ;;  %v2210_v46 = vpop.f32.mrb[24].mxu0 }
 0x1e4   :  { %v969_v49 = vadd.f32 %v2210_v46, %v2696_v12  ;;  %v960_v50 = vpop.f32.mrb[25].mxu0  ;;  %2284 = vmatprep.subr.bf16.mxu1 %v2647_v32 }
 0x1e5   :  { %v961_v51 = vadd.f32 %v2696_v12, %v960_v50  ;;  %v2211_v52 = vpop.f32.mrb[26].mxu0  ;;  %2236 = vmatprep.mubr.bf16.mxu1 %v1009_v45  ;;  %v2178_v1 = vpop.f32.mrb[8].mxu1 }
 0x1e6   :  { %v972_v27 = vadd.f32 %v2211_v52, %v2696_v12  ;;  %v963_v53 = vpop.f32.mrb[27].mxu0  ;;  %2237 = vmatmul.mubr.bf16.gmra.mrb[20].mxu1 %v1010_v26  ;;  %v1001_v55 = vmax.f32 %v969_v49, 0.0  ;;  %v810_v5 = vadd.f32 %v2178_v1, %v2564_v36 }
 0x1e7   :  { %v964_v30 = vadd.f32 %v2696_v12, %v963_v53  ;;  %2285 = vmatpush3.bf16.msra.mxu1 %v2647_v32  ;;  %v999_v60 = vmax.f32 %v961_v51, 0.0  ;;  %v525_v32 = vpop.f32.mrb[9].mxu1 }
 0x1e8   :  { %v1002_v54 = vmax.f32 %v972_v27, 0.0  ;;  %2286 = vmatprep.subr.bf16.mxu1 %v2655_v56  ;;  %v808_v9 = vadd.f32 %v2564_v36, %v525_v32  ;;  %v2179_v10 = vpop.f32.mrb[10].mxu1  ;;  %v826_v13 = vmax.f32 %v810_v5, 0.0 }
 0x1e9   :  { %v1000_v61 = vmax.f32 %v964_v30, 0.0  ;;  %v811_v14 = vadd.f32 %v2179_v10, %v2564_v36  ;;  %v528_v15 = vpop.f32.mrb[11].mxu1 }
 0x1ea   :  { %v1012_v62 = vpack.c.bf16 %v1002_v54, %v1001_v55  ;;  %v824_v17 = vmax.f32 %v808_v9, 0.0  ;;  %v809_v18 = vadd.f32 %v2564_v36, %v528_v15 }
 0x1eb   :  { %v1011_v63 = vpack.c.bf16 %v1000_v61, %v999_v60  ;;  %2287 = vmatpush3.bf16.msra.mxu1 %v2655_v56  ;;  %v2214_v0 = vpop.f32.mrb[28].mxu0  ;;  %v827_v22 = vmax.f32 %v811_v14, 0.0 }
 0x1ec   :  { %v985_v3 = vadd.f32 %v2214_v0, %v2696_v12  ;;  %v976_v4 = vpop.f32.mrb[29].mxu0  ;;  %2288 = vmatprep.subr.bf16.mxu1 %v2662_v33  ;;  %v825_v21 = vmax.f32 %v809_v18, 0.0 }
 0x1ed   :  { %v977_v6 = vadd.f32 %v2696_v12, %v976_v4  ;;  %v2215_v7 = vpop.f32.mrb[30].mxu0  ;;  %2240 = vmatprep.mubr.bf16.mxu1 %v1011_v63  ;;  %v1171_v29 = vpack.c.bf16 %v827_v22, %v826_v13  ;;  %v2182_v37 = vpop.f32.mrb[12].mxu1 }
 0x1ee   :  { %v988_v11 = vadd.f32 %v2215_v7, %v2696_v12  ;;  %v979_v56 = vpop.f32.mrb[31].mxu0  ;;  %2241 = vmatmul.mubr.bf16.gmra.mrb[24].mxu1 %v1012_v62  ;;  %v1005_v19 = vmax.f32 %v985_v3, 0.0  ;;  %v1170_v35 = vpack.c.bf16 %v825_v21, %v824_v17  ;;  %v814_v39 = vadd.f32 %v2182_v37, %v2564_v36  ;;  %v541_v40 = vpop.f32.mrb[13].mxu1 }
 0x1ef   :  { %v980_v16 = vadd.f32 %v2696_v12, %v979_v56  ;;  %2289 = vmatpush3.bf16.msra.mxu1 %v2662_v33  ;;  %v1003_v24 = vmax.f32 %v977_v6, 0.0  ;;  %v812_v42 = vadd.f32 %v2564_v36, %v541_v40  ;;  %v2183_v43 = vpop.f32.mrb[14].mxu1 }
 0x1f0   :  { %v1006_v20 = vmax.f32 %v988_v11, 0.0  ;;  %2290 = vmatprep.subr.bf16.mxu1 %v2669_v57  ;;  %2272 = vmatprep.mubr.bf16.mxu0 %v1170_v35  ;;  %v830_v26 = vmax.f32 %v814_v39, 0.0  ;;  %v815_v45 = vadd.f32 %v2183_v43, %v2564_v36  ;;  %v544_v46 = vpop.f32.mrb[15].mxu1 }
 0x1f1   :  { %v1004_v25 = vmax.f32 %v980_v16, 0.0  ;;  %2273 = vmatmul.mubr.bf16.gmra.mrb[40].mxu0 %v1171_v29  ;;  %v828_v50 = vmax.f32 %v812_v42, 0.0  ;;  %v813_v51 = vadd.f32 %v2564_v36, %v544_v46  ;;  %v2015_v36 = vld [vmem:[%s2785_s8] ss:$0 sm:$0xff] }
 0x1f2   :  { %v1014_v28 = vpack.c.bf16 %v1006_v20, %v1005_v19  ;;  %v831_v53 = vmax.f32 %v815_v45, 0.0 }
 0x1f3   :  { %v1013_v31 = vpack.c.bf16 %v1004_v25, %v1003_v24  ;;  %2291 = vmatpush3.bf16.msra.mxu1 %v2669_v57  ;;  %v2266_v34 = vpop.f32.mrb[32].mxu0  ;;  %v829_v54 = vmax.f32 %v813_v51, 0.0 }
 0x1f4   :  { %v1217_v33 = vadd.f32 %v2266_v34, %v2696_v12  ;;  %v1208_v38 = vpop.f32.mrb[33].mxu0  ;;  %2292 = vmatprep.subr.bf16.mxu1 %v2677_v58  ;;  %v1173_v61 = vpack.c.bf16 %v831_v53, %v830_v26 }
 0x1f5   :  { %v1209_v41 = vadd.f32 %v2696_v12, %v1208_v38  ;;  %2244 = vmatprep.mubr.bf16.mxu1 %v1013_v31  ;;  %v2267_v23 = vpop.f32.mrb[34].mxu0  ;;  %v1172_v63 = vpack.c.bf16 %v829_v54, %v828_v50 }
 0x1f6   :  { %v1220_v57 = vadd.f32 %v2267_v23, %v2696_v12  ;;  %2245 = vmatmul.mubr.bf16.gmra.mrb[28].mxu1 %v1014_v28  ;;  %v1211_v44 = vpop.f32.mrb[35].mxu0  ;;  %v1273_v52 = vmax.f32 %v1217_v33, 0.0 }
 0x1f7   :  { %v1212_v49 = vadd.f32 %v2696_v12, %v1211_v44  ;;  %2293 = vmatpush3.bf16.msra.mxu1 %v2677_v58  ;;  %v1271_v30 = vmax.f32 %v1209_v41, 0.0  ;;  %2276 = vmatprep.mubr.bf16.mxu0 %v1172_v63 }
 0x1f8   :  { %v1274_v27 = vmax.f32 %v1220_v57, 0.0  ;;  %2294 = vmatprep.subr.bf16.mxu1 %v2684_v59 }
 0x1f9   :  { %v1272_v55 = vmax.f32 %v1212_v49, 0.0  ;;  %2277 = vmatmul.mubr.bf16.gmra.mrb[44].mxu0 %v1173_v61 }
 0x1fa   :  { %v1288_v60 = vpack.c.bf16 %v1274_v27, %v1273_v52 }
 0x1fb   :  { %v1287_v62 = vpack.c.bf16 %v1272_v55, %v1271_v30  ;;  %2295 = vmatpush3.bf16.msra.mxu1 %v2684_v59  ;;  %v2270_v19 = vpop.f32.mrb[36].mxu0 }
 0x1fc   :  { %v1233_v20 = vadd.f32 %v2270_v19, %v2696_v12  ;;  %v1224_v22 = vpop.f32.mrb[37].mxu0 }
 0x1fd   :  { %2296 = vmatprep.mubr.bf16.mxu1 %v1287_v62  ;;  %v1225_v24 = vadd.f32 %v2696_v12, %v1224_v22  ;;  %v2271_v25 = vpop.f32.mrb[38].mxu0  ;;  %v1728_v62 = vmul.f32 %v2570_v47, %v2570_v47 }
 0x1fe   :  { %2297 = vmatmul.mubr.bf16.vlgmr.msra.gmra.mrb[32].mxu1 %v1288_v60  ;;  %v1277_v21 = vmax.f32 %v1233_v20, 0.0  ;;  %v1236_v28 = vadd.f32 %v2271_v25, %v2696_v12  ;;  %v1227_v29 = vpop.f32.mrb[39].mxu0 }
 0x1ff   :  { %v1275_v34 = vmax.f32 %v1225_v24, 0.0  ;;  %v1228_v35 = vadd.f32 %v2696_v12, %v1227_v29 }
 0x200   :  { %v1278_v38 = vmax.f32 %v1236_v28, 0.0 }
 0x201   :  { %v1276_v42 = vmax.f32 %v1228_v35, 0.0 }
 0x202   :  { %v1290_v26 = vpack.c.bf16 %v1278_v38, %v1277_v21 }
 0x203   :  { %v1289_v52 = vpack.c.bf16 %v1276_v42, %v1275_v34 }
 0x205   :  { %2300 = vmatprep.mubr.bf16.mxu1 %v1289_v52 }
 0x206   :  { %2301 = vmatmul.mubr.bf16.gmra.mrb[36].mxu1 %v1290_v26 }
 0x2b1   :  { %v2234_v58 = vpop.f32.mrb[16].mxu1 }
 0x2b2   :  { %v1103_v0 = vpop.f32.mrb[17].mxu1 }
 0x2b3   :  { %v2744_v1 = vadd.f32 %v2015_v36, %v1103_v0  ;;  %v2235_v3 = vpop.f32.mrb[18].mxu1 }
 0x2b4   :  { %v1106_v4 = vpop.f32.mrb[19].mxu1 }
 0x2b5   :  { %v2746_v5 = vadd.f32 %v2015_v36, %v1106_v4  ;;  %v1440_v59 = vmul.f32 %v2744_v1, %v2744_v1  ;;  %v1392_v58 = vmul.f32 %v2744_v1, %v2582_v2 }
 0x2b7   :  { %1456 = vadd.xlane.f32.xlu0 %v1440_v59  ;;  %v1441_v6 = vmul.f32 %v2746_v5, %v2746_v5  ;;  %v1393_v0 = vmul.f32 %v2746_v5, %v2588_v8 }
 0x2b9   :  { %v2238_v32 = vpop.f32.mrb[20].mxu1 }
 0x2ba   :  { %v1119_v7 = vpop.f32.mrb[21].mxu1 }
 0x2bb   :  { %v2239_v9 = vpop.f32.mrb[22].mxu1  ;;  %1458 = vadd.xlane.f32.xlu0 %v1441_v6 }
 0x2bc   :  { %v1122_v10 = vpop.f32.mrb[23].mxu1 }
 0x2c1   :  { %v2242_v11 = vpop.f32.mrb[24].mxu1 }
 0x2c2   :  { %v1135_v56 = vpop.f32.mrb[25].mxu1 }
 0x2c3   :  { %v2243_v13 = vpop.f32.mrb[26].mxu1 }
 0x2c4   :  { %v1138_v14 = vpop.f32.mrb[27].mxu1  ;;  %v2274_v37 = vpop.f32.mrb[40].mxu0 }
 0x2c5   :  { %v1249_v39 = vadd.f32 %v2274_v37, %v2696_v12  ;;  %v1240_v40 = vpop.f32.mrb[41].mxu0 }
 0x2c6   :  { %v1241_v43 = vadd.f32 %v2696_v12, %v1240_v40  ;;  %v2275_v57 = vpop.f32.mrb[42].mxu0 }
 0x2c7   :  { %v1281_v45 = vmax.f32 %v1249_v39, 0.0  ;;  %v1252_v46 = vadd.f32 %v2275_v57, %v2696_v12  ;;  %v1243_v49 = vpop.f32.mrb[43].mxu0 }
 0x2c8   :  { %v1279_v53 = vmax.f32 %v1241_v43, 0.0  ;;  %v1244_v55 = vadd.f32 %v2696_v12, %v1243_v49 }
 0x2c9   :  { %v2246_v15 = vpop.f32.mrb[28].mxu1  ;;  %v1282_v30 = vmax.f32 %v1252_v46, 0.0 }
 0x2ca   :  { %v1151_v16 = vpop.f32.mrb[29].mxu1  ;;  %v1280_v61 = vmax.f32 %v1244_v55, 0.0 }
 0x2cb   :  { %v2247_v17 = vpop.f32.mrb[30].mxu1  ;;  %v1292_v60 = vpack.c.bf16 %v1282_v30, %v1281_v45 }
 0x2cc   :  { %v1154_v18 = vpop.f32.mrb[31].mxu1  ;;  %v2278_v27 = vpop.f32.mrb[44].mxu0  ;;  %v1291_v63 = vpack.c.bf16 %v1280_v61, %v1279_v53 }
 0x2cd   :  { %v1265_v4 = vadd.f32 %v2278_v27, %v2696_v12  ;;  %v1256_v32 = vpop.f32.mrb[45].mxu0 }
 0x2ce   :  { %2304 = vmatprep.mubr.bf16.mxu1 %v1291_v63  ;;  %v1257_v6 = vadd.f32 %v2696_v12, %v1256_v32  ;;  %v2279_v7 = vpop.f32.mrb[46].mxu0 }
 0x2cf   :  { %2305 = vmatmul.mubr.bf16.gmra.mrb[40].mxu1 %v1292_v60  ;;  %v1285_v9 = vmax.f32 %v1265_v4, 0.0  ;;  %v1268_v2 = vadd.f32 %v2279_v7, %v2696_v12  ;;  %v1259_v1 = vpop.f32.mrb[47].mxu0 }
 0x2d0   :  { %v1283_v10 = vmax.f32 %v1257_v6, 0.0  ;;  %v1260_v8 = vadd.f32 %v2696_v12, %v1259_v1 }
 0x2d1   :  { %v2298_v31 = vpop.f32.mrb[32].mxu1  ;;  %v1286_v5 = vmax.f32 %v1268_v2, 0.0 }
 0x2d2   :  { %v1329_v33 = vpop.f32.mrb[33].mxu1  ;;  %v1284_v11 = vmax.f32 %v1260_v8, 0.0 }
 0x2d3   :  { %v1330_v41 = vadd.f32 %v2015_v36, %v1329_v33  ;;  %v2299_v23 = vpop.f32.mrb[34].mxu1 }
 0x2d4   :  { %v1332_v44 = vpop.f32.mrb[35].mxu1  ;;  %v1293_v56 = vpack.c.bf16 %v1284_v11, %v1283_v10 }
 0x2d5   :  { %v1333_v50 = vadd.f32 %v2015_v36, %v1332_v44  ;;  %v1680_v51 = vmul.f32 %v1330_v41, %v1330_v41  ;;  %v1729_v36 = vmul.f32 %v2572_v48, %v2572_v48  ;;  %v1632_v3 = vmul.f32 %v1330_v41, %v2570_v47 }
 0x2d6   :  { %v1294_v47 = vpack.c.bf16 %v1286_v5, %v1285_v9  ;;  %2308 = vmatprep.mubr.bf16.mxu1 %v1293_v56 }
 0x2d7   :  { %1696 = vadd.xlane.f32.xlu0 %v1680_v51  ;;  %v1681_v54 = vmul.f32 %v1333_v50, %v1333_v50  ;;  %v1633_v59 = vmul.f32 %v1333_v50, %v2572_v48  ;;  %v1505_v48 = vpop.xlane.xlu1 %1504 }
 0x2d8   :  { %2309 = vmatmul.mubr.bf16.gmra.mrb[44].mxu1 %v1294_v47 }
 0x2d9   :  { %1698 = vadd.xlane.f32.xlu1 %v1681_v54  ;;  %v2302_v54 = vpop.f32.mrb[36].mxu1 }
 0x2da   :  { %v1345_v60 = vpop.f32.mrb[37].mxu1 }
 0x2db   :  { %1744 = vadd.xlane.f32.xlu0 %v1728_v62  ;;  %v1507_v15 = vpop.xlane.xlu1 %1506  ;;  %v2303_v61 = vpop.f32.mrb[38].mxu1 }
 0x2dc   :  { %v1348_v62 = vpop.f32.mrb[39].mxu1 }
 0x2dd   :  { %1746 = vadd.xlane.f32.xlu1 %v1729_v36 }
 0x2df   :  { %1408 = vadd.xlane.f32.xlu0 %v1392_v58 }
 0x2e1   :  { %1410 = vadd.xlane.f32.xlu1 %v1393_v0 }
 0x2e3   :  { %1648 = vadd.xlane.f32.xlu0 %v1632_v3 }
 0x2e5   :  { %1650 = vadd.xlane.f32.xlu1 %v1633_v59 }
 0x344   :  { %v1457_v13 = vpop.xlane.xlu0 %1456 }
 0x345   :  { %v1552_v16 = vmul.f32 %v1505_v48, %v1457_v13 }
 0x347   :  { %v1568_v20 = vadd.f32 1e-24, %v1552_v16 }
 0x348   :  { %v1459_v14 = vpop.xlane.xlu0 %1458 }
 0x349   :  { %v1553_v17 = vmul.f32 %v1507_v15, %v1459_v14  ;;  %2362 = vrsqrt.f32 %v1568_v20 }
 0x34b   :  { %v1569_v22 = vadd.f32 1e-24, %v1553_v17 }
 0x34d   :  { %2364 = vrsqrt.f32 %v1569_v22 }
 0x353   :  { %v2363_v38 = vpop.eup %2362 }
 0x357   :  { %v2365_v40 = vpop.eup %2364 }
 0x364   :  { %v1697_v18 = vpop.xlane.xlu0 %1696 }
 0x366   :  { %v1699_v19 = vpop.xlane.xlu1 %1698 }
 0x368   :  { %v1745_v24 = vpop.xlane.xlu0 %1744 }
 0x369   :  { %v1792_v25 = vmul.f32 %v1745_v24, %v1697_v18 }
 0x36a   :  { %v1747_v21 = vpop.xlane.xlu1 %1746 }
 0x36b   :  { %v1808_v12 = vadd.f32 1e-24, %v1792_v25  ;;  %v1793_v28 = vmul.f32 %v1747_v21, %v1699_v19 }
 0x36c   :  { %v1409_v31 = vpop.xlane.xlu0 %1408 }
 0x36d   :  { %2366 = vrsqrt.f32 %v1808_v12  ;;  %v1809_v29 = vadd.f32 1e-24, %v1793_v28  ;;  %v1536_v35 = vmul.f32 2.0, %v1409_v31 }
 0x36e   :  { %v1411_v34 = vpop.xlane.xlu1 %1410 }
 0x36f   :  { %2368 = vrsqrt.f32 %v1809_v29  ;;  %v1537_v33 = vmul.f32 2.0, %v1411_v34  ;;  %v1600_v41 = vmul.f32 %v2363_v38, %v1536_v35 }
 0x370   :  { %v1649_v37 = vpop.xlane.xlu0 %1648 }
 0x371   :  { %v1776_v23 = vmul.f32 2.0, %v1649_v37  ;;  %v1601_v43 = vmul.f32 %v2365_v40, %v1537_v33  ;;  %v1616_v45 = vsub.f32 2.0, %v1600_v41 }
 0x372   :  { %v1651_v39 = vpop.xlane.xlu1 %1650 }
 0x373   :  { %v1777_v44 = vmul.f32 2.0, %v1651_v39  ;;  %v1617_v50 = vsub.f32 2.0, %v1601_v43 }
 0x377   :  { %v2367_v42 = vpop.eup %2366 }
 0x378   :  { %v1840_v57 = vmul.f32 %v2367_v42, %v1776_v23 }
 0x379   :  { %v2369_v26 = vpop.eup %2368 }
 0x37a   :  { %v1856_v46 = vsub.f32 2.0, %v1840_v57  ;;  %v1841_v49 = vmul.f32 %v2369_v26, %v1777_v44 }
 0x37c   :  { %v1857_v51 = vsub.f32 2.0, %v1841_v49  ;;  %v1872_v52 = vadd.f32 %v1856_v46, %v1616_v45 }
 0x37e   :  { %v1873_v27 = vadd.f32 %v1857_v51, %v1617_v50  ;;  %v1905_v53 = vsel %vm1904_vm0, %v1872_v52, 0.0 }
 0x380   :  { %v1906_v30 = vsel %vm1904_vm0, %v1873_v27, 0.0 }
 0x381   :  { %v1907_v55 = vadd.f32 %v1906_v30, %v1905_v53 }
 0x383   :  { %1936 = vadd.xlane.f32.xlu0 %v1907_v55 }
 0x3a2   :  { %v2306_v63 = vpop.f32.mrb[40].mxu1 }
 0x3a3   :  { %v1361_v36 = vpop.f32.mrb[41].mxu1 }
 0x3a4   :  { %v2307_v58 = vpop.f32.mrb[42].mxu1 }
 0x3a5   :  { %v1364_v0 = vpop.f32.mrb[43].mxu1 }
 0x3ab   :  { %v2310_v3 = vpop.f32.mrb[44].mxu1 }
 0x3ac   :  { %v1377_v4 = vpop.f32.mrb[45].mxu1 }
 0x3ad   :  { %v2311_v59 = vpop.f32.mrb[46].mxu1 }
 0x3ae   :  { %v1380_v32 = vpop.f32.mrb[47].mxu1 }
 0x410   :  { %v1937_v6 = vpop.xlane.xlu0 %1936 }
 0x411   :  { %v1938_v7 = vrot.slane %v1937_v6, 4 }
 0x413   :  { %v1939_v9 = vadd.f32 %v1938_v7, %v1937_v6 }
 0x415   :  { %v1940_v2 = vrot.slane %v1939_v9, 2 }
 0x417   :  { %v1941_v1 = vadd.f32 %v1940_v2, %v1939_v9 }
 0x419   :  { %v1942_v10 = vrot.slane %v1941_v1, 1 }
 0x41b   :  { %v1943_v8 = vadd.f32 %v1942_v10, %v1941_v1 }
 0x41d   :  { %2312 = vpush %v1943_v8 }
 0x44e   :  { %s2313_s8 = spop %2312 }
 0x44f   :  { %v1945_v5 = vstv %s2313_s8 }
 0x450   :  { %1946 = vst [vmem:[%s2786_s9] sm:$0xff] %v1945_v5 }

</bundles_post_ra>
